<compile_context>
chip_gen: v5e
topology: v5e:2x2
jax: 0.10.0
libtpu: 0.0.40
codegen_flags: <defaults>
</compile_context>

<pallas_src>
import functools

import jax
import jax.numpy as jnp
from jax.experimental import pallas as pl
from jax.experimental.pallas import tpu as pltpu

LANE = 128                       # padded channel width (covers hidden=32, out=32)
NEG_SLOPE = 0.01                 # torch.nn.LeakyReLU default
VMEM_LIMIT = 32 * 1024 * 1024    # explicit scoped-VMEM budget (fits v5e/v6e/v7x)


def _round_up(x, m):
    return (x + m - 1) // m * m


def _leaky_relu(v):
    return jnp.where(v > 0, v, NEG_SLOPE * v)


# ----------------------------- kernels -----------------------------------------------

def prelin_kernel(x_ref, w_ref, b_ref, out_ref):
    """h0 = x @ W_pre + b_pre, tiled over node rows."""
    h = jnp.dot(x_ref[...], w_ref[...], preferred_element_type=jnp.float32) + b_ref[...]
    out_ref[...] = h.astype(out_ref.dtype)


def sage_block_kernel(adj_ref, h_k_ref, h_self_ref, wcat_ref, bcat_ref,
                      w2_ref, b2_ref, out_ref, acc_ref, cat_ref):
    """One SAGEConv (+ following Linear + LeakyReLU) block.

    grid = (row_blocks, adj_col_blocks); the second axis is the mean-aggregation
    reduction.  acc_ref accumulates adj_tile @ h_tile in f32; on the last reduction
    step the fused lin_l/lin_r matmul, ReLU, following Linear and LeakyReLU run and
    the (tm, C) bf16 output block is stored lane-dense.
    """
    k = pl.program_id(1)

    @pl.when(k == 0)
    def _():
        acc_ref[...] = jnp.zeros_like(acc_ref)

    # mean-aggregation partial sum (adj rows are already 1/deg-normalized).
    acc_ref[...] += jnp.dot(adj_ref[...], h_k_ref[...],
                            preferred_element_type=jnp.float32)

    @pl.when(k == pl.num_programs(1) - 1)
    def _():
        C = h_self_ref.shape[-1]
        # fused SAGEConv: concat([agg, h_self], -1) @ [Wl; Wr] + b_l
        cat_ref[:, :C] = acc_ref[...].astype(cat_ref.dtype)
        cat_ref[:, C:] = h_self_ref[...]
        h = jnp.dot(cat_ref[...], wcat_ref[...],
                    preferred_element_type=jnp.float32) + bcat_ref[...]
        h = jnp.maximum(h, 0.0)                                       # relu
        # following Linear (lin_hh1 / lin_hh2 / lin_oo); dropout is identity in eval
        h = jnp.dot(h.astype(jnp.bfloat16), w2_ref[...],
                    preferred_element_type=jnp.float32) + b2_ref[...]
        out_ref[...] = _leaky_relu(h).astype(out_ref.dtype)


def head_kernel(p_ref, h_ref, w_oh_ref, b_oh_ref, w_h1_ref, b_h1_ref, out_ref, acc_ref):
    """global_mean_pool (tiled reduction) -> lin_oh (+ folded BatchNorm) -> LeakyReLU
    -> lin_h1 -> ReLU."""
    k = pl.program_id(0)

    @pl.when(k == 0)
    def _():
        acc_ref[...] = jnp.zeros_like(acc_ref)

    acc_ref[...] += jnp.dot(p_ref[...], h_ref[...],
                            preferred_element_type=jnp.float32)

    @pl.when(k == pl.num_programs(0) - 1)
    def _():
        z = jnp.dot(acc_ref[...].astype(jnp.bfloat16), w_oh_ref[...],
                    preferred_element_type=jnp.float32) + b_oh_ref[...]
        z = _leaky_relu(z)                                            # dropout = identity
        z = jnp.dot(z.astype(jnp.bfloat16), w_h1_ref[...],
                    preferred_element_type=jnp.float32) + b_h1_ref[...]
        out_ref[...] = jnp.maximum(z, 0.0)                            # final relu


# ----------------------------- pallas_call wrappers -----------------------------------

def _prelin(x_p, w, b, *, tm):
    n_pad, in_pad = x_p.shape
    c = w.shape[1]
    return pl.pallas_call(
        prelin_kernel,
        out_shape=jax.ShapeDtypeStruct((n_pad, c), jnp.bfloat16),
        grid_spec=pltpu.PrefetchScalarGridSpec(
            num_scalar_prefetch=0,
            grid=(n_pad // tm,),
            in_specs=[
                pl.BlockSpec((tm, in_pad), lambda i: (i, 0)),
                pl.BlockSpec((in_pad, c), lambda i: (0, 0)),
                pl.BlockSpec((1, c), lambda i: (0, 0)),
            ],
            out_specs=pl.BlockSpec((tm, c), lambda i: (i, 0)),
        ),
        compiler_params=pltpu.CompilerParams(
            dimension_semantics=("parallel",),
            vmem_limit_bytes=VMEM_LIMIT),
    )(x_p, w, b)


def _sage_layer(h, adj_b, wcat, bcat, w2, b2, *, tm, tk):
    n_pad, c = h.shape
    return pl.pallas_call(
        sage_block_kernel,
        out_shape=jax.ShapeDtypeStruct((n_pad, c), jnp.bfloat16),
        grid_spec=pltpu.PrefetchScalarGridSpec(
            num_scalar_prefetch=0,
            grid=(n_pad // tm, n_pad // tk),
            in_specs=[
                pl.BlockSpec((tm, tk), lambda i, k: (i, k)),      # adj tile
                pl.BlockSpec((tk, c), lambda i, k: (k, 0)),       # neighbor rows of h
                pl.BlockSpec((tm, c), lambda i, k: (i, 0)),       # self rows of h
                pl.BlockSpec((2 * c, c), lambda i, k: (0, 0)),    # fused [Wl; Wr]
                pl.BlockSpec((1, c), lambda i, k: (0, 0)),        # conv bias
                pl.BlockSpec((c, c), lambda i, k: (0, 0)),        # following Linear W
                pl.BlockSpec((1, c), lambda i, k: (0, 0)),        # following Linear b
            ],
            out_specs=pl.BlockSpec((tm, c), lambda i, k: (i, 0)),
            scratch_shapes=[pltpu.VMEM((tm, c), jnp.float32),
                            pltpu.VMEM((tm, 2 * c), jnp.bfloat16)],
        ),
        compiler_params=pltpu.CompilerParams(
            dimension_semantics=("parallel", "arbitrary"),
            vmem_limit_bytes=VMEM_LIMIT),
    )(adj_b, h, h, wcat, bcat, w2, b2)


def _head(pool_b, h3, w_oh, b_oh, w_h1, b_h1, *, tk):
    g_pad, n_pad = pool_b.shape
    c = h3.shape[1]
    return pl.pallas_call(
        head_kernel,
        out_shape=jax.ShapeDtypeStruct((g_pad, LANE), jnp.float32),
        grid_spec=pltpu.PrefetchScalarGridSpec(
            num_scalar_prefetch=0,
            grid=(n_pad // tk,),
            in_specs=[
                pl.BlockSpec((g_pad, tk), lambda k: (0, k)),      # pooling matrix tile
                pl.BlockSpec((tk, c), lambda k: (k, 0)),          # node features tile
                pl.BlockSpec((c, c), lambda k: (0, 0)),           # lin_oh (BN folded)
                pl.BlockSpec((1, c), lambda k: (0, 0)),
                pl.BlockSpec((c, LANE), lambda k: (0, 0)),        # lin_h1 (lane padded)
                pl.BlockSpec((1, LANE), lambda k: (0, 0)),
            ],
            out_specs=pl.BlockSpec((g_pad, LANE), lambda k: (0, 0)),
            scratch_shapes=[pltpu.VMEM((g_pad, c), jnp.float32)],
        ),
        compiler_params=pltpu.CompilerParams(
            dimension_semantics=("arbitrary",),
            vmem_limit_bytes=VMEM_LIMIT),
    )(pool_b, h3, w_oh, b_oh, w_h1, b_h1)


# ----------------------------- parameters ---------------------------------------------

def init_params(key, in_channels, hidden_channels, out_channels):
    """torch.nn.Linear-style init (U(-1/sqrt(fan_in), 1/sqrt(fan_in)))."""
    def lin(k, fan_in, fan_out, bias=True):
        k1, k2 = jax.random.split(k)
        bound = 1.0 / float(fan_in) ** 0.5
        w = jax.random.uniform(k1, (fan_in, fan_out), jnp.float32, -bound, bound)
        b = (jax.random.uniform(k2, (1, fan_out), jnp.float32, -bound, bound)
             if bias else None)
        return w, b

    ks = jax.random.split(key, 12)
    p = {}
    p["w_pre"], p["b_pre"] = lin(ks[0], in_channels, hidden_channels)
    # SAGEConv: lin_l (bias, on aggregated), lin_r (no bias, on root)
    p["c1_wl"], p["c1_bl"] = lin(ks[1], hidden_channels, hidden_channels)
    p["c1_wr"], _ = lin(ks[2], hidden_channels, hidden_channels, bias=False)
    p["c2_wl"], p["c2_bl"] = lin(ks[3], hidden_channels, hidden_channels)
    p["c2_wr"], _ = lin(ks[4], hidden_channels, hidden_channels, bias=False)
    p["c3_wl"], p["c3_bl"] = lin(ks[5], hidden_channels, out_channels)
    p["c3_wr"], _ = lin(ks[6], hidden_channels, out_channels, bias=False)
    p["w_hh1"], p["b_hh1"] = lin(ks[7], hidden_channels, hidden_channels)
    p["w_hh2"], p["b_hh2"] = lin(ks[8], hidden_channels, hidden_channels)
    p["w_oo"], p["b_oo"] = lin(ks[9], out_channels, out_channels)
    p["w_oh"], p["b_oh"] = lin(ks[10], out_channels, hidden_channels)
    p["w_h1"], p["b_h1"] = lin(ks[11], hidden_channels, 1)
    # BatchNorm1d(hidden_channels), eval-mode running stats (fresh init)
    p["bn_gamma"] = jnp.ones((hidden_channels,), jnp.float32)
    p["bn_beta"] = jnp.zeros((hidden_channels,), jnp.float32)
    p["bn_mean"] = jnp.zeros((hidden_channels,), jnp.float32)
    p["bn_var"] = jnp.ones((hidden_channels,), jnp.float32)
    return p


def _pad2(a, rows, cols, dtype):
    out = jnp.zeros((rows, cols), dtype)
    return out.at[:a.shape[0], :a.shape[1]].set(a.astype(dtype))


# ----------------------------- forward -------------------------------------------------

@functools.partial(jax.jit, static_argnames=("num_graphs",))
def sage_dsp_forward(params, x, edge_index, batch, *, num_graphs):
    """Eval-mode forward of SAGE_dsp. Returns (num_graphs, 1)."""
    n, in_ch = x.shape
    c = LANE
    in_pad = _round_up(in_ch, LANE)
    n_pad = _round_up(n, LANE)
    tm = 128
    tk = 512 if n_pad % 512 == 0 else (256 if n_pad % 256 == 0 else 128)
    g_pad = _round_up(num_graphs, 8)

    # ---- graph structure: dense row-normalized mean-aggregation matrix (bf16) ----
    # TODO(synk): for truly sparse graphs replace with a scalar-prefetch CSR gather.
    src, dst = edge_index[0], edge_index[1]
    adj = jnp.zeros((n_pad, n_pad), jnp.float32).at[dst, src].add(1.0)
    deg = jnp.sum(adj, axis=1, keepdims=True)
    adj_b = (adj / jnp.maximum(deg, 1.0)).astype(jnp.bfloat16)

    # ---- global_mean_pool as a dense (G_pad, N_pad) row-normalized matrix ----
    batch_p = jnp.full((n_pad,), -1, jnp.int32).at[:n].set(batch.astype(jnp.int32))
    onehot = (batch_p[None, :] ==
              jnp.arange(g_pad, dtype=jnp.int32)[:, None]).astype(jnp.float32)
    cnt = jnp.sum(onehot, axis=1, keepdims=True)
    pool_b = (onehot / jnp.maximum(cnt, 1.0)).astype(jnp.bfloat16)

    # ---- pad / fuse weights (channels -> 128, [Wl; Wr] fused, BN folded into lin_oh) ----
    def wcat(wl, wr):
        w = jnp.zeros((2 * c, c), jnp.bfloat16)
        w = w.at[:wl.shape[0], :wl.shape[1]].set(wl.astype(jnp.bfloat16))
        w = w.at[c:c + wr.shape[0], :wr.shape[1]].set(wr.astype(jnp.bfloat16))
        return w

    w_pre_p = _pad2(params["w_pre"], in_pad, c, jnp.bfloat16)
    b_pre_p = _pad2(params["b_pre"], 1, c, jnp.float32)

    wcat1 = wcat(params["c1_wl"], params["c1_wr"])
    wcat2 = wcat(params["c2_wl"], params["c2_wr"])
    wcat3 = wcat(params["c3_wl"], params["c3_wr"])
    bcat1 = _pad2(params["c1_bl"], 1, c, jnp.float32)
    bcat2 = _pad2(params["c2_bl"], 1, c, jnp.float32)
    bcat3 = _pad2(params["c3_bl"], 1, c, jnp.float32)

    w_hh1_p = _pad2(params["w_hh1"], c, c, jnp.bfloat16)
    b_hh1_p = _pad2(params["b_hh1"], 1, c, jnp.float32)
    w_hh2_p = _pad2(params["w_hh2"], c, c, jnp.bfloat16)
    b_hh2_p = _pad2(params["b_hh2"], 1, c, jnp.float32)
    w_oo_p = _pad2(params["w_oo"], c, c, jnp.bfloat16)
    b_oo_p = _pad2(params["b_oo"], 1, c, jnp.float32)

    # BatchNorm1d (eval) folded into lin_oh:  (p @ W + b) * s + t == p @ (W*s) + (b*s + t)
    inv_std = params["bn_gamma"] / jnp.sqrt(params["bn_var"] + 1e-5)
    shift = params["bn_beta"] - params["bn_mean"] * inv_std
    w_oh_f = params["w_oh"] * inv_std[None, :]
    b_oh_f = params["b_oh"] * inv_std[None, :] + shift[None, :]
    w_oh_p = _pad2(w_oh_f, c, c, jnp.bfloat16)
    b_oh_p = _pad2(b_oh_f, 1, c, jnp.float32)
    w_h1_p = _pad2(params["w_h1"], c, LANE, jnp.bfloat16)   # only column 0 is live
    b_h1_p = _pad2(params["b_h1"], 1, LANE, jnp.float32)

    # ---- pad inputs ----
    x_p = jnp.zeros((n_pad, in_pad), jnp.bfloat16).at[:n, :in_ch].set(
        x.astype(jnp.bfloat16))

    # ---- forward ----
    h = _prelin(x_p, w_pre_p, b_pre_p, tm=tm)                                # prelin
    h = _sage_layer(h, adj_b, wcat1, bcat1, w_hh1_p, b_hh1_p, tm=tm, tk=tk)  # conv1 block
    h = _sage_layer(h, adj_b, wcat2, bcat2, w_hh2_p, b_hh2_p, tm=tm, tk=tk)  # conv2 block
    h = _sage_layer(h, adj_b, wcat3, bcat3, w_oo_p, b_oo_p, tm=tm, tk=tk)    # conv3 block
    out_pad = _head(pool_b, h, w_oh_p, b_oh_p, w_h1_p, b_h1_p, tk=tk)        # pooled head

    return out_pad[:num_graphs, :1]


# ----------------------------- demo -----------------------------------------------------

if __name__ == "__main__":
    IN_CH, HIDDEN, OUT_CH = 16, 32, 32
    N_NODES, N_EDGES, N_GRAPHS = 16, 40, 2

    root = jax.random.PRNGKey(0)
    k_param, k_x, k_e = jax.random.split(root, 3)

    params = init_params(k_param, IN_CH, HIDDEN, OUT_CH)

    x = jax.random.normal(k_x, (N_NODES, IN_CH), jnp.float32)
    edge_index = jax.random.randint(k_e, (2, N_EDGES), 0, N_NODES, dtype=jnp.int32)
    batch = jnp.concatenate(
        [jnp.zeros(N_NODES // 2, jnp.int32),
         jnp.ones(N_NODES - N_NODES // 2, jnp.int32)]
    )

    out = sage_dsp_forward(params, x, edge_index, batch, num_graphs=N_GRAPHS)
    jax.block_until_ready(out)
    assert out.shape == (N_GRAPHS, 1)
    print("KERNEL_OK")
</pallas_src>

<mosaic_0001>
module attributes {stable_mosaic.version = 11 : i64} {
  func.func @prelin_kernel(%arg0: i32, %arg1: memref<128x128xbf16, #tpu.memory_space<vmem>>, %arg2: memref<128x128xbf16, #tpu.memory_space<vmem>>, %arg3: memref<1x128xf32, #tpu.memory_space<vmem>>, %arg4: memref<128x128xbf16, #tpu.memory_space<vmem>>) attributes {dimension_semantics = [#tpu.dimension_semantics<parallel>], iteration_bounds = array<i64: 1>, scalar_prefetch = 0 : i64, scratch_operands = 0 : i64, tpu.core_type = #tpu.core_type<tc>, window_params = [{transform_indices = @transform_0, window_bounds = array<i64: 128, 128>}, {pipeline_mode = #tpu.pipeline_mode<synchronous>, transform_indices = @transform_1, window_bounds = array<i64: 128, 128>}, {pipeline_mode = #tpu.pipeline_mode<synchronous>, transform_indices = @transform_2, window_bounds = array<i64: 1, 128>}, {transform_indices = @transform_3, window_bounds = array<i64: 128, 128>}]} {
    %c0 = arith.constant 0 : index
    %c0_0 = arith.constant 0 : index
    %0 = vector.load %arg1[%c0, %c0_0] : memref<128x128xbf16, #tpu.memory_space<vmem>>, vector<128x128xbf16>
    %c0_1 = arith.constant 0 : index
    %c0_2 = arith.constant 0 : index
    %1 = vector.load %arg2[%c0_1, %c0_2] : memref<128x128xbf16, #tpu.memory_space<vmem>>, vector<128x128xbf16>
    %cst = arith.constant dense<0.000000e+00> : vector<128x128xf32>
    %2 = tpu.matmul %0, %1, %cst {dimension_numbers = #tpu.dot_dimension_numbers<[1], [0], [0], [1], [0, 0, 1, 1], [], []>} : vector<128x128xbf16>, vector<128x128xbf16>, vector<128x128xf32> -> vector<128x128xf32>
    %c0_3 = arith.constant 0 : index
    %c0_4 = arith.constant 0 : index
    %3 = vector.load %arg3[%c0_3, %c0_4] : memref<1x128xf32, #tpu.memory_space<vmem>>, vector<1x128xf32>
    %4 = vector.broadcast %3 : vector<1x128xf32> to vector<128x128xf32>
    %5 = arith.addf %2, %4 : vector<128x128xf32>
    %6 = arith.truncf %5 : vector<128x128xf32> to vector<128x128xbf16>
    %c0_5 = arith.constant 0 : index
    %c0_6 = arith.constant 0 : index
    %7 = vector.load %arg4[%c0_5, %c0_6] : memref<128x128xbf16, #tpu.memory_space<vmem>>, vector<128x128xbf16>
    tpu.vector_store %arg4[%c0_5, %c0_6], %6 {strides = array<i32>} : memref<128x128xbf16, #tpu.memory_space<vmem>>, vector<128x128xbf16>,
    return
  }
  func.func @transform_0(%arg0: i32) -> (i32, i32) {
    %c0_i32 = arith.constant 0 : i32
    %c0_i32_0 = arith.constant 0 : i32
    return %arg0, %c0_i32 : i32, i32
  }
  func.func @transform_1(%arg0: i32) -> (i32, i32) {
    %c0_i32 = arith.constant 0 : i32
    %c0_i32_0 = arith.constant 0 : i32
    %c0_i32_1 = arith.constant 0 : i32
    return %c0_i32, %c0_i32_0 : i32, i32
  }
  func.func @transform_2(%arg0: i32) -> (i32, i32) {
    %c0_i32 = arith.constant 0 : i32
    %c0_i32_0 = arith.constant 0 : i32
    %c0_i32_1 = arith.constant 0 : i32
    return %c0_i32, %c0_i32_0 : i32, i32
  }
  func.func @transform_3(%arg0: i32) -> (i32, i32) {
    %c0_i32 = arith.constant 0 : i32
    %c0_i32_0 = arith.constant 0 : i32
    return %arg0, %c0_i32 : i32, i32
  }
}

module attributes {stable_mosaic.version = 11 : i64} {
  func.func @sage_block_kernel(%arg0: i32, %arg1: i32, %arg2: memref<128x128xbf16, #tpu.memory_space<vmem>>, %arg3: memref<128x128xbf16, #tpu.memory_space<vmem>>, %arg4: memref<128x128xbf16, #tpu.memory_space<vmem>>, %arg5: memref<256x128xbf16, #tpu.memory_space<vmem>>, %arg6: memref<1x128xf32, #tpu.memory_space<vmem>>, %arg7: memref<128x128xbf16, #tpu.memory_space<vmem>>, %arg8: memref<1x128xf32, #tpu.memory_space<vmem>>, %arg9: memref<128x128xbf16, #tpu.memory_space<vmem>>, %arg10: memref<128x128xf32, #tpu.memory_space<vmem>>, %arg11: memref<128x256xbf16, #tpu.memory_space<vmem>>) attributes {dimension_semantics = [#tpu.dimension_semantics<parallel>, #tpu.dimension_semantics<arbitrary>], iteration_bounds = array<i64: 1, 1>, scalar_prefetch = 0 : i64, scratch_operands = 2 : i64, tpu.core_type = #tpu.core_type<tc>, window_params = [{transform_indices = @transform_0, window_bounds = array<i64: 128, 128>}, {transform_indices = @transform_1, window_bounds = array<i64: 128, 128>}, {transform_indices = @transform_2, window_bounds = array<i64: 128, 128>}, {pipeline_mode = #tpu.pipeline_mode<synchronous>, transform_indices = @transform_3, window_bounds = array<i64: 256, 128>}, {pipeline_mode = #tpu.pipeline_mode<synchronous>, transform_indices = @transform_4, window_bounds = array<i64: 1, 128>}, {pipeline_mode = #tpu.pipeline_mode<synchronous>, transform_indices = @transform_5, window_bounds = array<i64: 128, 128>}, {pipeline_mode = #tpu.pipeline_mode<synchronous>, transform_indices = @transform_6, window_bounds = array<i64: 1, 128>}, {transform_indices = @transform_7, window_bounds = array<i64: 128, 128>}]} {
    %c0_i32 = arith.constant 0 : i32
    %0 = arith.cmpi eq, %arg1, %c0_i32 : i32
    %1 = arith.extui %0 : i1 to i32
    %c0_i32_0 = arith.constant 0 : i32
    %2 = arith.cmpi ne, %1, %c0_i32_0 : i32
    scf.if %2 {
      %cst_10 = arith.constant 0.000000e+00 : f32
      %12 = vector.broadcast %cst_10 : f32 to vector<128x128xf32>
      %c0_11 = arith.constant 0 : index
      %c0_12 = arith.constant 0 : index
      %13 = vector.load %arg10[%c0_11, %c0_12] : memref<128x128xf32, #tpu.memory_space<vmem>>, vector<128x128xf32>
      tpu.vector_store %arg10[%c0_11, %c0_12], %12 {strides = array<i32>} : memref<128x128xf32, #tpu.memory_space<vmem>>, vector<128x128xf32>,
    } else {
    }
    %c0 = arith.constant 0 : index
    %c0_1 = arith.constant 0 : index
    %3 = vector.load %arg10[%c0, %c0_1] : memref<128x128xf32, #tpu.memory_space<vmem>>, vector<128x128xf32>
    %c0_2 = arith.constant 0 : index
    %c0_3 = arith.constant 0 : index
    %4 = vector.load %arg2[%c0_2, %c0_3] : memref<128x128xbf16, #tpu.memory_space<vmem>>, vector<128x128xbf16>
    %c0_4 = arith.constant 0 : index
    %c0_5 = arith.constant 0 : index
    %5 = vector.load %arg3[%c0_4, %c0_5] : memref<128x128xbf16, #tpu.memory_space<vmem>>, vector<128x128xbf16>
    %cst = arith.constant dense<0.000000e+00> : vector<128x128xf32>
    %6 = tpu.matmul %4, %5, %cst {dimension_numbers = #tpu.dot_dimension_numbers<[1], [0], [0], [1], [0, 0, 1, 1], [], []>} : vector<128x128xbf16>, vector<128x128xbf16>, vector<128x128xf32> -> vector<128x128xf32>
    %7 = arith.addf %3, %6 : vector<128x128xf32>
    %c0_6 = arith.constant 0 : index
    %c0_7 = arith.constant 0 : index
    %8 = vector.load %arg10[%c0_6, %c0_7] : memref<128x128xf32, #tpu.memory_space<vmem>>, vector<128x128xf32>
    tpu.vector_store %arg10[%c0_6, %c0_7], %7 {strides = array<i32>} : memref<128x128xf32, #tpu.memory_space<vmem>>, vector<128x128xf32>,
    %c0_i32_8 = arith.constant 0 : i32
    %9 = arith.cmpi eq, %arg1, %c0_i32_8 : i32
    %10 = arith.extui %9 : i1 to i32
    %c0_i32_9 = arith.constant 0 : i32
    %11 = arith.cmpi ne, %10, %c0_i32_9 : i32
    scf.if %11 {
      %c0_10 = arith.constant 0 : index
      %c0_11 = arith.constant 0 : index
      %12 = vector.load %arg10[%c0_10, %c0_11] : memref<128x128xf32, #tpu.memory_space<vmem>>, vector<128x128xf32>
      %13 = arith.truncf %12 : vector<128x128xf32> to vector<128x128xbf16>
      %c0_12 = arith.constant 0 : index
      %c0_13 = arith.constant 0 : index
      %14 = vector.load %arg11[%c0_12, %c0_13] : memref<128x256xbf16, #tpu.memory_space<vmem>>, vector<128x128xbf16>
      tpu.vector_store %arg11[%c0_12, %c0_13], %13 {strides = array<i32>} : memref<128x256xbf16, #tpu.memory_space<vmem>>, vector<128x128xbf16>,
      %c0_14 = arith.constant 0 : index
      %c0_15 = arith.constant 0 : index
      %15 = vector.load %arg4[%c0_14, %c0_15] : memref<128x128xbf16, #tpu.memory_space<vmem>>, vector<128x128xbf16>
      %c0_16 = arith.constant 0 : index
      %c128 = arith.constant 128 : index
      %16 = vector.load %arg11[%c0_16, %c128] : memref<128x256xbf16, #tpu.memory_space<vmem>>, vector<128x128xbf16>
      tpu.vector_store %arg11[%c0_16, %c128], %15 {strides = array<i32>} : memref<128x256xbf16, #tpu.memory_space<vmem>>, vector<128x128xbf16>,
      %c0_17 = arith.constant 0 : index
      %c0_18 = arith.constant 0 : index
      %17 = vector.load %arg11[%c0_17, %c0_18] : memref<128x256xbf16, #tpu.memory_space<vmem>>, vector<128x256xbf16>
      %c0_19 = arith.constant 0 : index
      %c0_20 = arith.constant 0 : index
      %18 = vector.load %arg5[%c0_19, %c0_20] : memref<256x128xbf16, #tpu.memory_space<vmem>>, vector<256x128xbf16>
      %cst_21 = arith.constant dense<0.000000e+00> : vector<128x128xf32>
      %19 = tpu.matmul %17, %18, %cst_21 {dimension_numbers = #tpu.dot_dimension_numbers<[1], [0], [0], [1], [0, 0, 1, 1], [], []>} : vector<128x256xbf16>, vector<256x128xbf16>, vector<128x128xf32> -> vector<128x128xf32>
      %c0_22 = arith.constant 0 : index
      %c0_23 = arith.constant 0 : index
      %20 = vector.load %arg6[%c0_22, %c0_23] : memref<1x128xf32, #tpu.memory_space<vmem>>, vector<1x128xf32>
      %21 = vector.broadcast %20 : vector<1x128xf32> to vector<128x128xf32>
      %22 = arith.addf %19, %21 : vector<128x128xf32>
      %cst_24 = arith.constant 0.000000e+00 : f32
      %23 = vector.broadcast %cst_24 : f32 to vector<128x128xf32>
      %24 = arith.maximumf %22, %23 : vector<128x128xf32>
      %25 = arith.truncf %24 : vector<128x128xf32> to vector<128x128xbf16>
      %c0_25 = arith.constant 0 : index
      %c0_26 = arith.constant 0 : index
      %26 = vector.load %arg7[%c0_25, %c0_26] : memref<128x128xbf16, #tpu.memory_space<vmem>>, vector<128x128xbf16>
      %cst_27 = arith.constant dense<0.000000e+00> : vector<128x128xf32>
      %27 = tpu.matmul %25, %26, %cst_27 {dimension_numbers = #tpu.dot_dimension_numbers<[1], [0], [0], [1], [0, 0, 1, 1], [], []>} : vector<128x128xbf16>, vector<128x128xbf16>, vector<128x128xf32> -> vector<128x128xf32>
      %c0_28 = arith.constant 0 : index
      %c0_29 = arith.constant 0 : index
      %28 = vector.load %arg8[%c0_28, %c0_29] : memref<1x128xf32, #tpu.memory_space<vmem>>, vector<1x128xf32>
      %29 = vector.broadcast %28 : vector<1x128xf32> to vector<128x128xf32>
      %30 = arith.addf %27, %29 : vector<128x128xf32>
      %cst_30 = arith.constant 0.000000e+00 : f32
      %31 = vector.broadcast %cst_30 : f32 to vector<128x128xf32>
      %32 = arith.cmpf ogt, %30, %31 : vector<128x128xf32>
      %cst_31 = arith.constant 0.00999999977 : f32
      %33 = vector.broadcast %cst_31 : f32 to vector<128x128xf32>
      %34 = arith.mulf %33, %30 : vector<128x128xf32>
      %35 = arith.select %32, %30, %34 : vector<128x128xi1>, vector<128x128xf32>
      %36 = arith.truncf %35 : vector<128x128xf32> to vector<128x128xbf16>
      %c0_32 = arith.constant 0 : index
      %c0_33 = arith.constant 0 : index
      %37 = vector.load %arg9[%c0_32, %c0_33] : memref<128x128xbf16, #tpu.memory_space<vmem>>, vector<128x128xbf16>
      tpu.vector_store %arg9[%c0_32, %c0_33], %36 {strides = array<i32>} : memref<128x128xbf16, #tpu.memory_space<vmem>>, vector<128x128xbf16>,
    } else {
    }
    return
  }
  func.func @transform_0(%arg0: i32, %arg1: i32) -> (i32, i32) {
    %c0_i32 = arith.constant 0 : i32
    return %arg0, %arg1 : i32, i32
  }
  func.func @transform_1(%arg0: i32, %arg1: i32) -> (i32, i32) {
    %c0_i32 = arith.constant 0 : i32
    %c0_i32_0 = arith.constant 0 : i32
    return %arg1, %c0_i32 : i32, i32
  }
  func.func @transform_2(%arg0: i32, %arg1: i32) -> (i32, i32) {
    %c0_i32 = arith.constant 0 : i32
    %c0_i32_0 = arith.constant 0 : i32
    return %arg0, %c0_i32 : i32, i32
  }
  func.func @transform_3(%arg0: i32, %arg1: i32) -> (i32, i32) {
    %c0_i32 = arith.constant 0 : i32
    %c0_i32_0 = arith.constant 0 : i32
    %c0_i32_1 = arith.constant 0 : i32
    return %c0_i32, %c0_i32_0 : i32, i32
  }
  func.func @transform_4(%arg0: i32, %arg1: i32) -> (i32, i32) {
    %c0_i32 = arith.constant 0 : i32
    %c0_i32_0 = arith.constant 0 : i32
    %c0_i32_1 = arith.constant 0 : i32
    return %c0_i32, %c0_i32_0 : i32, i32
  }
  func.func @transform_5(%arg0: i32, %arg1: i32) -> (i32, i32) {
    %c0_i32 = arith.constant 0 : i32
    %c0_i32_0 = arith.constant 0 : i32
    %c0_i32_1 = arith.constant 0 : i32
    return %c0_i32, %c0_i32_0 : i32, i32
  }
  func.func @transform_6(%arg0: i32, %arg1: i32) -> (i32, i32) {
    %c0_i32 = arith.constant 0 : i32
    %c0_i32_0 = arith.constant 0 : i32
    %c0_i32_1 = arith.constant 0 : i32
    return %c0_i32, %c0_i32_0 : i32, i32
  }
  func.func @transform_7(%arg0: i32, %arg1: i32) -> (i32, i32) {
    %c0_i32 = arith.constant 0 : i32
    %c0_i32_0 = arith.constant 0 : i32
    return %arg0, %c0_i32 : i32, i32
  }
}

module attributes {stable_mosaic.version = 11 : i64} {
  func.func @head_kernel(%arg0: i32, %arg1: memref<8x128xbf16, #tpu.memory_space<vmem>>, %arg2: memref<128x128xbf16, #tpu.memory_space<vmem>>, %arg3: memref<128x128xbf16, #tpu.memory_space<vmem>>, %arg4: memref<1x128xf32, #tpu.memory_space<vmem>>, %arg5: memref<128x128xbf16, #tpu.memory_space<vmem>>, %arg6: memref<1x128xf32, #tpu.memory_space<vmem>>, %arg7: memref<8x128xf32, #tpu.memory_space<vmem>>, %arg8: memref<8x128xf32, #tpu.memory_space<vmem>>) attributes {dimension_semantics = [#tpu.dimension_semantics<arbitrary>], iteration_bounds = array<i64: 1>, scalar_prefetch = 0 : i64, scratch_operands = 1 : i64, tpu.core_type = #tpu.core_type<tc>, window_params = [{transform_indices = @transform_0, window_bounds = array<i64: 8, 128>}, {transform_indices = @transform_1, window_bounds = array<i64: 128, 128>}, {pipeline_mode = #tpu.pipeline_mode<synchronous>, transform_indices = @transform_2, window_bounds = array<i64: 128, 128>}, {pipeline_mode = #tpu.pipeline_mode<synchronous>, transform_indices = @transform_3, window_bounds = array<i64: 1, 128>}, {pipeline_mode = #tpu.pipeline_mode<synchronous>, transform_indices = @transform_4, window_bounds = array<i64: 128, 128>}, {pipeline_mode = #tpu.pipeline_mode<synchronous>, transform_indices = @transform_5, window_bounds = array<i64: 1, 128>}, {pipeline_mode = #tpu.pipeline_mode<synchronous>, transform_indices = @transform_6, window_bounds = array<i64: 8, 128>}]} {
    %c0_i32 = arith.constant 0 : i32
    %0 = arith.cmpi eq, %arg0, %c0_i32 : i32
    %1 = arith.extui %0 : i1 to i32
    %c0_i32_0 = arith.constant 0 : i32
    %2 = arith.cmpi ne, %1, %c0_i32_0 : i32
    scf.if %2 {
      %cst_10 = arith.constant 0.000000e+00 : f32
      %12 = vector.broadcast %cst_10 : f32 to vector<8x128xf32>
      %c0_11 = arith.constant 0 : index
      %c0_12 = arith.constant 0 : index
      %13 = vector.load %arg8[%c0_11, %c0_12] : memref<8x128xf32, #tpu.memory_space<vmem>>, vector<8x128xf32>
      tpu.vector_store %arg8[%c0_11, %c0_12], %12 {strides = array<i32>} : memref<8x128xf32, #tpu.memory_space<vmem>>, vector<8x128xf32>,
    } else {
    }
    %c0 = arith.constant 0 : index
    %c0_1 = arith.constant 0 : index
    %3 = vector.load %arg8[%c0, %c0_1] : memref<8x128xf32, #tpu.memory_space<vmem>>, vector<8x128xf32>
    %c0_2 = arith.constant 0 : index
    %c0_3 = arith.constant 0 : index
    %4 = vector.load %arg1[%c0_2, %c0_3] : memref<8x128xbf16, #tpu.memory_space<vmem>>, vector<8x128xbf16>
    %c0_4 = arith.constant 0 : index
    %c0_5 = arith.constant 0 : index
    %5 = vector.load %arg2[%c0_4, %c0_5] : memref<128x128xbf16, #tpu.memory_space<vmem>>, vector<128x128xbf16>
    %cst = arith.constant dense<0.000000e+00> : vector<8x128xf32>
    %6 = tpu.matmul %4, %5, %cst {dimension_numbers = #tpu.dot_dimension_numbers<[1], [0], [0], [1], [0, 0, 1, 1], [], []>} : vector<8x128xbf16>, vector<128x128xbf16>, vector<8x128xf32> -> vector<8x128xf32>
    %7 = arith.addf %3, %6 : vector<8x128xf32>
    %c0_6 = arith.constant 0 : index
    %c0_7 = arith.constant 0 : index
    %8 = vector.load %arg8[%c0_6, %c0_7] : memref<8x128xf32, #tpu.memory_space<vmem>>, vector<8x128xf32>
    tpu.vector_store %arg8[%c0_6, %c0_7], %7 {strides = array<i32>} : memref<8x128xf32, #tpu.memory_space<vmem>>, vector<8x128xf32>,
    %c0_i32_8 = arith.constant 0 : i32
    %9 = arith.cmpi eq, %arg0, %c0_i32_8 : i32
    %10 = arith.extui %9 : i1 to i32
    %c0_i32_9 = arith.constant 0 : i32
    %11 = arith.cmpi ne, %10, %c0_i32_9 : i32
    scf.if %11 {
      %c0_10 = arith.constant 0 : index
      %c0_11 = arith.constant 0 : index
      %12 = vector.load %arg8[%c0_10, %c0_11] : memref<8x128xf32, #tpu.memory_space<vmem>>, vector<8x128xf32>
      %13 = arith.truncf %12 : vector<8x128xf32> to vector<8x128xbf16>
      %c0_12 = arith.constant 0 : index
      %c0_13 = arith.constant 0 : index
      %14 = vector.load %arg3[%c0_12, %c0_13] : memref<128x128xbf16, #tpu.memory_space<vmem>>, vector<128x128xbf16>
      %cst_14 = arith.constant dense<0.000000e+00> : vector<8x128xf32>
      %15 = tpu.matmul %13, %14, %cst_14 {dimension_numbers = #tpu.dot_dimension_numbers<[1], [0], [0], [1], [0, 0, 1, 1], [], []>} : vector<8x128xbf16>, vector<128x128xbf16>, vector<8x128xf32> -> vector<8x128xf32>
      %c0_15 = arith.constant 0 : index
      %c0_16 = arith.constant 0 : index
      %16 = vector.load %arg4[%c0_15, %c0_16] : memref<1x128xf32, #tpu.memory_space<vmem>>, vector<1x128xf32>
      %17 = vector.broadcast %16 : vector<1x128xf32> to vector<8x128xf32>
      %18 = arith.addf %15, %17 : vector<8x128xf32>
      %cst_17 = arith.constant 0.000000e+00 : f32
      %19 = vector.broadcast %cst_17 : f32 to vector<8x128xf32>
      %20 = arith.cmpf ogt, %18, %19 : vector<8x128xf32>
      %cst_18 = arith.constant 0.00999999977 : f32
      %21 = vector.broadcast %cst_18 : f32 to vector<8x128xf32>
      %22 = arith.mulf %21, %18 : vector<8x128xf32>
      %23 = arith.select %20, %18, %22 : vector<8x128xi1>, vector<8x128xf32>
      %24 = arith.truncf %23 : vector<8x128xf32> to vector<8x128xbf16>
      %c0_19 = arith.constant 0 : index
      %c0_20 = arith.constant 0 : index
      %25 = vector.load %arg5[%c0_19, %c0_20] : memref<128x128xbf16, #tpu.memory_space<vmem>>, vector<128x128xbf16>
      %cst_21 = arith.constant dense<0.000000e+00> : vector<8x128xf32>
      %26 = tpu.matmul %24, %25, %cst_21 {dimension_numbers = #tpu.dot_dimension_numbers<[1], [0], [0], [1], [0, 0, 1, 1], [], []>} : vector<8x128xbf16>, vector<128x128xbf16>, vector<8x128xf32> -> vector<8x128xf32>
      %c0_22 = arith.constant 0 : index
      %c0_23 = arith.constant 0 : index
      %27 = vector.load %arg6[%c0_22, %c0_23] : memref<1x128xf32, #tpu.memory_space<vmem>>, vector<1x128xf32>
      %28 = vector.broadcast %27 : vector<1x128xf32> to vector<8x128xf32>
      %29 = arith.addf %26, %28 : vector<8x128xf32>
      %cst_24 = arith.constant 0.000000e+00 : f32
      %30 = vector.broadcast %cst_24 : f32 to vector<8x128xf32>
      %31 = arith.maximumf %29, %30 : vector<8x128xf32>
      %c0_25 = arith.constant 0 : index
      %c0_26 = arith.constant 0 : index
      %32 = vector.load %arg7[%c0_25, %c0_26] : memref<8x128xf32, #tpu.memory_space<vmem>>, vector<8x128xf32>
      tpu.vector_store %arg7[%c0_25, %c0_26], %31 {strides = array<i32>} : memref<8x128xf32, #tpu.memory_space<vmem>>, vector<8x128xf32>,
    } else {
    }
    return
  }
  func.func @transform_0(%arg0: i32) -> (i32, i32) {
    %c0_i32 = arith.constant 0 : i32
    %c0_i32_0 = arith.constant 0 : i32
    return %c0_i32, %arg0 : i32, i32
  }
  func.func @transform_1(%arg0: i32) -> (i32, i32) {
    %c0_i32 = arith.constant 0 : i32
    %c0_i32_0 = arith.constant 0 : i32
    return %arg0, %c0_i32 : i32, i32
  }
  func.func @transform_2(%arg0: i32) -> (i32, i32) {
    %c0_i32 = arith.constant 0 : i32
    %c0_i32_0 = arith.constant 0 : i32
    %c0_i32_1 = arith.constant 0 : i32
    return %c0_i32, %c0_i32_0 : i32, i32
  }
  func.func @transform_3(%arg0: i32) -> (i32, i32) {
    %c0_i32 = arith.constant 0 : i32
    %c0_i32_0 = arith.constant 0 : i32
    %c0_i32_1 = arith.constant 0 : i32
    return %c0_i32, %c0_i32_0 : i32, i32
  }
  func.func @transform_4(%arg0: i32) -> (i32, i32) {
    %c0_i32 = arith.constant 0 : i32
    %c0_i32_0 = arith.constant 0 : i32
    %c0_i32_1 = arith.constant 0 : i32
    return %c0_i32, %c0_i32_0 : i32, i32
  }
  func.func @transform_5(%arg0: i32) -> (i32, i32) {
    %c0_i32 = arith.constant 0 : i32
    %c0_i32_0 = arith.constant 0 : i32
    %c0_i32_1 = arith.constant 0 : i32
    return %c0_i32, %c0_i32_0 : i32, i32
  }
  func.func @transform_6(%arg0: i32) -> (i32, i32) {
    %c0_i32 = arith.constant 0 : i32
    %c0_i32_0 = arith.constant 0 : i32
    %c0_i32_1 = arith.constant 0 : i32
    return %c0_i32, %c0_i32_0 : i32, i32
  }
}

</mosaic_0001>

<bundles_post_ra>
// kernel: sage_dsp_forward.5
= control target key start
LH: loop header
LB: loop body
LE: loop exit
PB: predicated region body
PF: predicated region fallthrough
CT: control target
= control target key end

     0   :  { %s478_s1 = inlined_call_operand.vmem [shape: bf16[128,128], index: 1, kind: input, shape index: {}]   ;;  %s479_s2 = inlined_call_operand.vmem [shape: f32[1,128], index: 2, kind: input, shape index: {}]   ;;  %s480_s0 = inlined_call_operand.vmem [shape: bf16[128,128], index: 0, kind: input, shape index: {}]   ;;  %s481_s3 = inlined_call_operand.vmem [shape: bf16[128,128], index: 3, kind: output, shape index: {}]  }
   0x1   :  { %v310_v0 = vld [vmem:[%s478_s1 + $0x38] sm:$0xff]  ;;  %v309_v1 = vld [vmem:[%s478_s1 + $0x30] sm:$0xff]  ;;  %v308_v2 = vld [vmem:[%s478_s1 + $0x28] sm:$0xff] }
   0x2   :  { %146 = vmatpush.bf16.msra.mxu0 %v310_v0  ;;  %358 = vmatpush.bf16.msra.mxu1 %v310_v0  ;;  %v307_v3 = vld [vmem:[%s478_s1 + $0x20] sm:$0xff]  ;;  %v306_v4 = vld [vmem:[%s478_s1 + $0x18] sm:$0xff]  ;;  %v305_v5 = vld [vmem:[%s478_s1 + $0x10] sm:$0xff] }
   0x3   :  { %359 = vmatpush.bf16.msra.mxu2 %v310_v0  ;;  %360 = vmatpush.bf16.msra.mxu3 %v310_v0  ;;  %v304_v6 = vld [vmem:[%s478_s1 + $0x8] sm:$0xff]  ;;  %v303_v7 = vld [vmem:[%s478_s1] sm:$0xff]  ;;  %v297_v9 = vld [vmem:[%s480_s0 + $0x10] sm:$0xff] }
   0x4   :  { %v295_v8 = vld [vmem:[%s480_s0] sm:$0xff]  ;;  %v301_v11 = vld [vmem:[%s480_s0 + $0x30] sm:$0xff]  ;;  %v296_v12 = vld [vmem:[%s480_s0 + $0x8] sm:$0xff] }
   0x5   :  { %v299_v10 = vld [vmem:[%s480_s0 + $0x20] sm:$0xff]  ;;  %v298_v13 = vld [vmem:[%s480_s0 + $0x18] sm:$0xff]  ;;  %v300_v14 = vld [vmem:[%s480_s0 + $0x28] sm:$0xff] }
   0x6   :  { %147 = vmatpush.bf16.msra.mxu0 %v309_v1  ;;  %361 = vmatpush.bf16.msra.mxu1 %v309_v1  ;;  %v302_v15 = vld [vmem:[%s480_s0 + $0x38] sm:$0xff]  ;;  %v382_v18 = vld [vmem:[%s479_s2] ss:$0 sm:$0xff] }
   0x7   :  { %362 = vmatpush.bf16.msra.mxu2 %v309_v1  ;;  %363 = vmatpush.bf16.msra.mxu3 %v309_v1 }
   0xa   :  { %148 = vmatpush.bf16.msra.mxu0 %v308_v2  ;;  %364 = vmatpush.bf16.msra.mxu1 %v308_v2 }
   0xb   :  { %365 = vmatpush.bf16.msra.mxu2 %v308_v2  ;;  %366 = vmatpush.bf16.msra.mxu3 %v308_v2 }
   0xe   :  { %149 = vmatpush.bf16.msra.mxu0 %v307_v3  ;;  %367 = vmatpush.bf16.msra.mxu1 %v307_v3 }
   0xf   :  { %368 = vmatpush.bf16.msra.mxu2 %v307_v3  ;;  %369 = vmatpush.bf16.msra.mxu3 %v307_v3 }
  0x12   :  { %150 = vmatpush.bf16.msra.mxu0 %v306_v4  ;;  %370 = vmatpush.bf16.msra.mxu1 %v306_v4 }
  0x13   :  { %371 = vmatpush.bf16.msra.mxu2 %v306_v4  ;;  %372 = vmatpush.bf16.msra.mxu3 %v306_v4 }
  0x16   :  { %151 = vmatpush.bf16.msra.mxu0 %v305_v5  ;;  %373 = vmatpush.bf16.msra.mxu1 %v305_v5 }
  0x17   :  { %374 = vmatpush.bf16.msra.mxu2 %v305_v5  ;;  %375 = vmatpush.bf16.msra.mxu3 %v305_v5 }
  0x1a   :  { %152 = vmatpush.bf16.msra.mxu0 %v304_v6  ;;  %376 = vmatpush.bf16.msra.mxu1 %v304_v6 }
  0x1b   :  { %377 = vmatpush.bf16.msra.mxu2 %v304_v6  ;;  %378 = vmatpush.bf16.msra.mxu3 %v304_v6 }
  0x1e   :  { %153 = vmatpush.bf16.msra.mxu0 %v303_v7  ;;  %379 = vmatpush.bf16.msra.mxu1 %v303_v7 }
  0x1f   :  { %380 = vmatpush.bf16.msra.mxu2 %v303_v7  ;;  %381 = vmatpush.bf16.msra.mxu3 %v303_v7 }
  0x21   :  { %154 = vmatmul.bf16.vlgmr.msra.gmra.mxu0 %v295_v8  ;;  %164 = vmatmul.bf16.vlgmr.msra.gmra.mxu1 %v297_v9 }
  0x22   :  { %174 = vmatmul.bf16.vlgmr.msra.gmra.mxu2 %v299_v10  ;;  %184 = vmatmul.bf16.vlgmr.msra.gmra.mxu3 %v301_v11 }
  0x31   :  { %159 = vmatmul.bf16.gmra.mxu0 %v296_v12  ;;  %169 = vmatmul.bf16.gmra.mxu1 %v298_v13 }
  0x32   :  { %179 = vmatmul.bf16.gmra.mxu2 %v300_v14  ;;  %189 = vmatmul.bf16.gmra.mxu3 %v302_v15 }
  0x9e   :  { %v155_v16 = vpop.f32.mrf.mxu0  ;;  %v165_v17 = vpop.f32.mrf.mxu1 }
  0x9f   :  { %v156_v23 = vadd.f32 %v382_v18, %v155_v16  ;;  %v166_v24 = vadd.f32 %v382_v18, %v165_v17 }
  0xa5   :  { %v175_v19 = vpop.f32.mrf.mxu2  ;;  %v185_v20 = vpop.f32.mrf.mxu3 }
  0xa6   :  { %v157_v21 = vpop.f32.mrf.mxu0  ;;  %v167_v22 = vpop.f32.mrf.mxu1  ;;  %v176_v31 = vadd.f32 %v382_v18, %v175_v19  ;;  %v186_v32 = vadd.f32 %v382_v18, %v185_v20 }
  0xa7   :  { %v158_v25 = vadd.f32 %v382_v18, %v157_v21  ;;  %v168_v26 = vadd.f32 %v382_v18, %v167_v22 }
  0xa9   :  { %v314_v27 = vpack.c.bf16 %v158_v25, %v156_v23  ;;  %v324_v28 = vpack.c.bf16 %v168_v26, %v166_v24 }
  0xab   :  { %315 = vst [vmem:[%s481_s3] sm:$0xff] %v314_v27  }
  0xac   :  { %352 = vst [vmem:[%s481_s3 + $0x10] sm:$0xff] %v324_v28  }
  0xad   :  { %v177_v29 = vpop.f32.mrf.mxu2  ;;  %v187_v30 = vpop.f32.mrf.mxu3 }
  0xae   :  { %v178_v33 = vadd.f32 %v382_v18, %v177_v29  ;;  %v188_v34 = vadd.f32 %v382_v18, %v187_v30  ;;  %v160_v35 = vpop.f32.mrf.mxu0  ;;  %v170_v36 = vpop.f32.mrf.mxu1 }
  0xaf   :  { %v161_v43 = vadd.f32 %v382_v18, %v160_v35  ;;  %v171_v44 = vadd.f32 %v382_v18, %v170_v36 }
  0xb0   :  { %v334_v37 = vpack.c.bf16 %v178_v33, %v176_v31  ;;  %v344_v38 = vpack.c.bf16 %v188_v34, %v186_v32 }
  0xb2   :  { %354 = vst [vmem:[%s481_s3 + $0x20] sm:$0xff] %v334_v37  }
  0xb3   :  { %356 = vst [vmem:[%s481_s3 + $0x30] sm:$0xff] %v344_v38  }
  0xb5   :  { %v180_v39 = vpop.f32.mrf.mxu2  ;;  %v190_v40 = vpop.f32.mrf.mxu3 }
  0xb6   :  { %v162_v41 = vpop.f32.mrf.mxu0  ;;  %v172_v42 = vpop.f32.mrf.mxu1  ;;  %v181_v51 = vadd.f32 %v382_v18, %v180_v39  ;;  %v191_v52 = vadd.f32 %v382_v18, %v190_v40 }
  0xb7   :  { %v163_v45 = vadd.f32 %v382_v18, %v162_v41  ;;  %v173_v46 = vadd.f32 %v382_v18, %v172_v42 }
  0xb9   :  { %v319_v47 = vpack.c.bf16 %v163_v45, %v161_v43  ;;  %v329_v48 = vpack.c.bf16 %v173_v46, %v171_v44 }
  0xbb   :  { %351 = vst [vmem:[%s481_s3 + $0x8] sm:$0xff] %v319_v47  }
  0xbc   :  { %353 = vst [vmem:[%s481_s3 + $0x18] sm:$0xff] %v329_v48  }
  0xbd   :  { %v182_v49 = vpop.f32.mrf.mxu2  ;;  %v192_v50 = vpop.f32.mrf.mxu3 }
  0xbe   :  { %v183_v53 = vadd.f32 %v382_v18, %v182_v49  ;;  %v193_v54 = vadd.f32 %v382_v18, %v192_v50 }
  0xc0   :  { %v339_v55 = vpack.c.bf16 %v183_v53, %v181_v51  ;;  %v349_v56 = vpack.c.bf16 %v193_v54, %v191_v52 }
  0xc2   :  { %355 = vst [vmem:[%s481_s3 + $0x28] sm:$0xff] %v339_v55  }
  0xc3   :  { %357 = vst [vmem:[%s481_s3 + $0x38] sm:$0xff] %v349_v56  }

// kernel: sage_dsp_forward.6
= control target key start
LH: loop header
LB: loop body
LE: loop exit
PB: predicated region body
PF: predicated region fallthrough
CT: control target
= control target key end

     0   :  { %s1508_s1 = inlined_call_operand.vmem [shape: bf16[128,128], index: 1, kind: input, shape index: {}, may-alias: {1,2}]   ;;  %s1509_s0 = inlined_call_operand.vmem [shape: bf16[128,128], index: 0, kind: input, shape index: {}]   ;;  %s1510_s3 = inlined_call_operand.vmem [shape: bf16[256,128], index: 3, kind: input, shape index: {}]   ;;  %s1511_s2 = inlined_call_operand.vmem [shape: bf16[128,128], index: 2, kind: input, shape index: {}, may-alias: {1,2}]   ;;  %s1512_s4 = inlined_call_operand.vmem [shape: f32[1,128], index: 4, kind: input, shape index: {}]   ;;  %s1513_s5 = inlined_call_operand.vmem [shape: bf16[128,128], index: 5, kind: input, shape index: {}]   ;;  %s1514_s6 = inlined_call_operand.vmem [shape: f32[1,128], index: 6, kind: input, shape index: {}]   ;;  %s1515_s7 = inlined_call_operand.vmem [shape: bf16[128,128], index: 7, kind: output, shape index: {}]  }
   0x1   :  { %v1144_v0 = vld [vmem:[%s1508_s1 + $0x38] sm:$0xff]  ;;  %v1143_v1 = vld [vmem:[%s1508_s1 + $0x30] sm:$0xff]  ;;  %v1142_v2 = vld [vmem:[%s1508_s1 + $0x28] sm:$0xff] }
   0x2   :  { %190 = vmatpush.bf16.msra.mxu0 %v1144_v0  ;;  %v1141_v3 = vld [vmem:[%s1508_s1 + $0x20] sm:$0xff]  ;;  %v1140_v4 = vld [vmem:[%s1508_s1 + $0x18] sm:$0xff]  ;;  %v1139_v5 = vld [vmem:[%s1508_s1 + $0x10] sm:$0xff] }
   0x3   :  { %v1138_v6 = vld [vmem:[%s1508_s1 + $0x8] sm:$0xff]  ;;  %v1137_v7 = vld [vmem:[%s1508_s1] sm:$0xff]  ;;  %v1131_v10 = vld [vmem:[%s1509_s0 + $0x10] sm:$0xff] }
   0x4   :  { %v1129_v8 = vld [vmem:[%s1509_s0] sm:$0xff]  ;;  %v1130_v9 = vld [vmem:[%s1509_s0 + $0x8] sm:$0xff]  ;;  %v1132_v11 = vld [vmem:[%s1509_s0 + $0x18] sm:$0xff] }
   0x5   :  { %v1133_v12 = vld [vmem:[%s1509_s0 + $0x20] sm:$0xff]  ;;  %v1176_v13 = vld [vmem:[%s1510_s3 + $0x78] sm:$0xff]  ;;  %v1175_v14 = vld [vmem:[%s1510_s3 + $0x70] sm:$0xff] }
   0x6   :  { %191 = vmatpush.bf16.msra.mxu0 %v1143_v1  ;;  %631 = vmatpush.bf16.msra.mxu2 %v1176_v13  ;;  %v1174_v15 = vld [vmem:[%s1510_s3 + $0x68] sm:$0xff]  ;;  %v1168_v17 = vld [vmem:[%s1510_s3 + $0x38] sm:$0xff]  ;;  %v1173_v18 = vld [vmem:[%s1510_s3 + $0x60] sm:$0xff] }
   0x7   :  { %v1134_v16 = vld [vmem:[%s1509_s0 + $0x28] sm:$0xff]  ;;  %582 = vmatpush.bf16.msra.mxu1 %v1168_v17  ;;  %v1167_v19 = vld [vmem:[%s1510_s3 + $0x30] sm:$0xff]  ;;  %v1172_v20 = vld [vmem:[%s1510_s3 + $0x58] sm:$0xff] }
   0x8   :  { %v1166_v21 = vld [vmem:[%s1510_s3 + $0x28] sm:$0xff]  ;;  %v1171_v22 = vld [vmem:[%s1510_s3 + $0x50] sm:$0xff]  ;;  %v322_v23 = vld [vmem:[%s1511_s2] sm:$0xf] }
   0x9   :  { %v323_v24 = vld [vmem:[%s1511_s2 + $0x4] sm:$0xf]  ;;  %v1135_v25 = vld [vmem:[%s1509_s0 + $0x30] sm:$0xff]  ;;  %338 = vst [vmem:[#allocation3 + $0x4] sm:$0xf] %v322_v23  ;;  %v1170_v27 = vld [vmem:[%s1510_s3 + $0x48] sm:$0xff] }
   0xa   :  { %192 = vmatpush.bf16.msra.mxu0 %v1142_v2  ;;  %632 = vmatpush.bf16.msra.mxu2 %v1175_v14  ;;  %v1165_v26 = vld [vmem:[%s1510_s3 + $0x20] sm:$0xff]  ;;  %339 = vst [vmem:[#allocation3 + $0xc] sm:$0xf] %v323_v24  ;;  %v1164_v28 = vld [vmem:[%s1510_s3 + $0x18] sm:$0xff]  ;;  %v1163_v33 = vld [vmem:[%s1510_s3 + $0x10] sm:$0xff] }
   0xb   :  { %583 = vmatpush.bf16.msra.mxu1 %v1167_v19  ;;  %v1169_v29 = vld [vmem:[%s1510_s3 + $0x40] sm:$0xff]  ;;  %v1162_v34 = vld [vmem:[%s1510_s3 + $0x8] sm:$0xff]  ;;  %v1136_v37 = vld [vmem:[%s1509_s0 + $0x38] sm:$0xff] }
   0xc   :  { %v324_v35 = vld [vmem:[%s1511_s2 + $0x8] sm:$0xf]  ;;  %v325_v36 = vld [vmem:[%s1511_s2 + $0xc] sm:$0xf]  ;;  %v1161_v38 = vld [vmem:[%s1510_s3] sm:$0xff] }
   0xd   :  { %340 = vst [vmem:[#allocation3 + $0x14] sm:$0xf] %v324_v35  ;;  %v326_v42 = vld [vmem:[%s1511_s2 + $0x10] sm:$0xf]  ;;  %v327_v43 = vld [vmem:[%s1511_s2 + $0x14] sm:$0xf] }
   0xe   :  { %193 = vmatpush.bf16.msra.mxu0 %v1141_v3  ;;  %633 = vmatpush.bf16.msra.mxu2 %v1174_v15  ;;  %341 = vst [vmem:[#allocation3 + $0x1c] sm:$0xf] %v325_v36  ;;  %v328_v51 = vld [vmem:[%s1511_s2 + $0x18] sm:$0xf]  ;;  %v329_v52 = vld [vmem:[%s1511_s2 + $0x1c] sm:$0xf] }
   0xf   :  { %584 = vmatpush.bf16.msra.mxu1 %v1166_v21  ;;  %342 = vst [vmem:[#allocation3 + $0x24] sm:$0xf] %v326_v42  ;;  %v330_v63 = vld [vmem:[%s1511_s2 + $0x20] sm:$0xf]  ;;  %v331_v0 = vld [vmem:[%s1511_s2 + $0x24] sm:$0xf] }
  0x10   :  { %v1145_v30 = vld [vmem:[#allocation3 + $0x4] sm:$0xf]  ;;  %343 = vst [vmem:[#allocation3 + $0x2c] sm:$0xf] %v327_v43  ;;  %v334_v23 = vld [vmem:[%s1511_s2 + $0x30] sm:$0xf] }
  0x11   :  { %v973_v31 = vld [vmem:[#allocation3 + $0x8] sm:$0xf0]  ;;  %344 = vst [vmem:[#allocation3 + $0x34] sm:$0xf] %v328_v51  ;;  %v335_v24 = vld [vmem:[%s1511_s2 + $0x34] sm:$0xf] }
  0x12   :  { %194 = vmatpush.bf16.msra.mxu0 %v1140_v4  ;;  %634 = vmatpush.bf16.msra.mxu2 %v1173_v18  ;;  %v976_v32 = vor.u32 %v1145_v30, %v973_v31  ;;  %345 = vst [vmem:[#allocation3 + $0x3c] sm:$0xf] %v329_v52  ;;  %v336_v35 = vld [vmem:[%s1511_s2 + $0x38] sm:$0xf]  ;;  %v337_v36 = vld [vmem:[%s1511_s2 + $0x3c] sm:$0xf] }
  0x13   :  { %585 = vmatpush.bf16.msra.mxu1 %v1165_v26  ;;  %346 = vst [vmem:[#allocation3 + $0x44] sm:$0xf] %v330_v63 }
  0x14   :  { %v1147_v39 = vld [vmem:[#allocation3 + $0x14] sm:$0xf]  ;;  %347 = vst [vmem:[#allocation3 + $0x4c] sm:$0xf] %v331_v0 }
  0x15   :  { %v981_v40 = vld [vmem:[#allocation3 + $0x18] sm:$0xf0]  ;;  %350 = vst [vmem:[#allocation3 + $0x64] sm:$0xf] %v334_v23 }
  0x16   :  { %195 = vmatpush.bf16.msra.mxu0 %v1139_v5  ;;  %635 = vmatpush.bf16.msra.mxu2 %v1172_v20  ;;  %v984_v41 = vor.u32 %v1147_v39, %v981_v40  ;;  %v1149_v46 = vld [vmem:[#allocation3 + $0x24] sm:$0xf]  ;;  %351 = vst [vmem:[#allocation3 + $0x6c] sm:$0xf] %v335_v24 }
  0x17   :  { %586 = vmatpush.bf16.msra.mxu1 %v1164_v28  ;;  %v989_v47 = vld [vmem:[#allocation3 + $0x28] sm:$0xf0]  ;;  %352 = vst [vmem:[#allocation3 + $0x74] sm:$0xf] %v336_v35 }
  0x18   :  { %v992_v49 = vor.u32 %v1149_v46, %v989_v47  ;;  %v1151_v58 = vld [vmem:[#allocation3 + $0x34] sm:$0xf]  ;;  %353 = vst [vmem:[#allocation3 + $0x7c] sm:$0xf] %v337_v36  ;;  %v1184_v47 = vld [vmem:[%s1513_s5 + $0x38] sm:$0xff] }
  0x19   :  { %v997_v59 = vld [vmem:[#allocation3 + $0x38] sm:$0xf0]  ;;  %772 = vmatpush.bf16.msra.mxu3 %v1184_v47 }
  0x1a   :  { %196 = vmatpush.bf16.msra.mxu0 %v1138_v6  ;;  %636 = vmatpush.bf16.msra.mxu2 %v1171_v22  ;;  %v1000_v61 = vor.u32 %v1151_v58, %v997_v59  ;;  %v1153_v6 = vld [vmem:[#allocation3 + $0x44] sm:$0xf] }
  0x1b   :  { %587 = vmatpush.bf16.msra.mxu1 %v1163_v33 }
  0x1c   :  { %v1157_v30 = vld [vmem:[#allocation3 + $0x64] sm:$0xf] }
  0x1d   :  { %v1021_v31 = vld [vmem:[#allocation3 + $0x68] sm:$0xf0] }
  0x1e   :  { %197 = vmatpush.bf16.msra.mxu0 %v1137_v7  ;;  %637 = vmatpush.bf16.msra.mxu2 %v1170_v27  ;;  %v1005_v7 = vld [vmem:[#allocation3 + $0x48] sm:$0xf0]  ;;  %v1024_v33 = vor.u32 %v1157_v30, %v1021_v31  ;;  %v1159_v42 = vld [vmem:[#allocation3 + $0x74] sm:$0xf] }
  0x1f   :  { %588 = vmatpush.bf16.msra.mxu1 %v1162_v34  ;;  %v1029_v43 = vld [vmem:[#allocation3 + $0x78] sm:$0xf0] }
  0x21   :  { %198 = vmatmul.bf16.vlgmr.msra.gmra.mxu0 %v1129_v8 }
  0x22   :  { %638 = vmatpush.bf16.msra.mxu2 %v1169_v29 }
  0x23   :  { %589 = vmatpush.bf16.msra.mxu1 %v1161_v38 }
  0x25   :  { %639 = vmatmul.bf16.vlgmr.msra.gmra.mxu2 %v976_v32 }
  0x31   :  { %203 = vmatmul.bf16.gmra.mxu0 %v1130_v9  ;;  %v1008_v9 = vor.u32 %v1153_v6, %v1005_v7 }
  0x35   :  { %644 = vmatmul.bf16.gmra.mxu2 %v984_v41 }
  0x41   :  { %208 = vmatmul.bf16.gmra.mxu0 %v1131_v10 }
  0x45   :  { %649 = vmatmul.bf16.gmra.mxu2 %v992_v49 }
  0x51   :  { %213 = vmatmul.bf16.gmra.mxu0 %v1132_v11  ;;  %v332_v11 = vld [vmem:[%s1511_s2 + $0x28] sm:$0xf] }
  0x52   :  { %348 = vst [vmem:[#allocation3 + $0x54] sm:$0xf] %v332_v11 }
  0x55   :  { %654 = vmatmul.bf16.gmra.mxu2 %v1000_v61 }
  0x59   :  { %v1155_v18 = vld [vmem:[#allocation3 + $0x54] sm:$0xf] }
  0x61   :  { %218 = vmatmul.bf16.gmra.mxu0 %v1133_v12  ;;  %v333_v12 = vld [vmem:[%s1511_s2 + $0x2c] sm:$0xf] }
  0x62   :  { %349 = vst [vmem:[#allocation3 + $0x5c] sm:$0xf] %v333_v12  ;;  %v1445_v12 = vld [vmem:[%s1512_s4] ss:$0 sm:$0xff] }
  0x65   :  { %659 = vmatmul.bf16.gmra.mxu2 %v1008_v9 }
  0x69   :  { %v1013_v19 = vld [vmem:[#allocation3 + $0x58] sm:$0xf0] }
  0x6a   :  { %v1016_v21 = vor.u32 %v1155_v18, %v1013_v19 }
  0x71   :  { %223 = vmatmul.bf16.gmra.mxu0 %v1134_v16 }
  0x75   :  { %664 = vmatmul.bf16.gmra.mxu2 %v1016_v21 }
  0x81   :  { %228 = vmatmul.bf16.gmra.mxu0 %v1135_v25 }
  0x85   :  { %669 = vmatmul.bf16.gmra.mxu2 %v1024_v33 }
  0x91   :  { %233 = vmatmul.bf16.gmra.mxu0 %v1136_v37 }
  0x9e   :  { %v199_v44 = vpop.f32.mrf.mxu0 }
  0x9f   :  { %v290_v45 = vpack.c.bf16 %v199_v44, %v199_v44 }
  0xa1   :  { %306 = vst [vmem:[#allocation3] sm:$0xf] %v290_v45  ;;  %v1032_v45 = vor.u32 %v1159_v42, %v1029_v43 }
  0xa3   :  { %674 = vmatmul.bf16.gmra.mxu2 %v1032_v45 }
  0xa6   :  { %v201_v48 = vpop.f32.mrf.mxu0 }
  0xa7   :  { %v291_v50 = vpack.c.bf16 %v201_v48, %v201_v48 }
  0xa8   :  { %v971_v55 = vld [vmem:[#allocation3] sm:$0xf]  ;;  %v640_v0 = vpop.f32.mrf.mxu2 }
  0xa9   :  { %307 = vst [vmem:[#allocation3 + $0x8] sm:$0xf] %v291_v50 }
  0xae   :  { %v204_v53 = vpop.f32.mrf.mxu0 }
  0xaf   :  { %v292_v54 = vpack.c.bf16 %v204_v53, %v204_v53  ;;  %v1183_v53 = vld [vmem:[%s1513_s5 + $0x30] sm:$0xff] }
  0xb0   :  { %v1146_v56 = vld [vmem:[#allocation3 + $0x4] sm:$0xf0]  ;;  %773 = vmatpush.bf16.msra.mxu3 %v1183_v53  ;;  %v642_v6 = vpop.f32.mrf.mxu2 }
  0xb1   :  { %308 = vst [vmem:[#allocation3 + $0x10] sm:$0xf] %v292_v54  ;;  %v972_v57 = vor.u32 %v1146_v56, %v971_v55  ;;  %v1182_v54 = vld [vmem:[%s1513_s5 + $0x28] sm:$0xff] }
  0xb3   :  { %590 = vmatmul.bf16.vlgmr.msra.gmra.mxu1 %v972_v57  ;;  %v1181_v57 = vld [vmem:[%s1513_s5 + $0x20] sm:$0xff] }
  0xb4   :  { %774 = vmatpush.bf16.msra.mxu3 %v1182_v54 }
  0xb6   :  { %v206_v60 = vpop.f32.mrf.mxu0 }
  0xb7   :  { %v293_v62 = vpack.c.bf16 %v206_v60, %v206_v60 }
  0xb8   :  { %v979_v3 = vld [vmem:[#allocation3 + $0x10] sm:$0xf]  ;;  %775 = vmatpush.bf16.msra.mxu3 %v1181_v57 }
  0xb9   :  { %309 = vst [vmem:[#allocation3 + $0x18] sm:$0xf] %v293_v62  ;;  %v1180_v62 = vld [vmem:[%s1513_s5 + $0x18] sm:$0xff] }
  0xbc   :  { %776 = vmatpush.bf16.msra.mxu3 %v1180_v62 }
  0xbe   :  { %v209_v1 = vpop.f32.mrf.mxu0 }
  0xbf   :  { %v294_v2 = vpack.c.bf16 %v209_v1, %v209_v1  ;;  %v1179_v1 = vld [vmem:[%s1513_s5 + $0x10] sm:$0xff] }
  0xc0   :  { %v1148_v4 = vld [vmem:[#allocation3 + $0x14] sm:$0xf0]  ;;  %777 = vmatpush.bf16.msra.mxu3 %v1179_v1 }
  0xc1   :  { %310 = vst [vmem:[#allocation3 + $0x20] sm:$0xf] %v294_v2  ;;  %v980_v5 = vor.u32 %v1148_v4, %v979_v3  ;;  %v1178_v4 = vld [vmem:[%s1513_s5 + $0x8] sm:$0xff] }
  0xc3   :  { %595 = vmatmul.bf16.gmra.mxu1 %v980_v5  ;;  %v1177_v5 = vld [vmem:[%s1513_s5] sm:$0xff] }
  0xc4   :  { %778 = vmatpush.bf16.msra.mxu3 %v1178_v4 }
  0xc6   :  { %v211_v8 = vpop.f32.mrf.mxu0 }
  0xc7   :  { %v295_v10 = vpack.c.bf16 %v211_v8, %v211_v8 }
  0xc8   :  { %v987_v15 = vld [vmem:[#allocation3 + $0x20] sm:$0xf]  ;;  %779 = vmatpush.bf16.msra.mxu3 %v1177_v5 }
  0xc9   :  { %311 = vst [vmem:[#allocation3 + $0x28] sm:$0xf] %v295_v10  ;;  %v645_v10 = vpop.f32.mrf.mxu2 }
  0xce   :  { %v214_v13 = vpop.f32.mrf.mxu0 }
  0xcf   :  { %v296_v14 = vpack.c.bf16 %v214_v13, %v214_v13 }
  0xd0   :  { %v1150_v16 = vld [vmem:[#allocation3 + $0x24] sm:$0xf0] }
  0xd1   :  { %312 = vst [vmem:[#allocation3 + $0x30] sm:$0xf] %v296_v14  ;;  %v988_v17 = vor.u32 %v1150_v16, %v987_v15  ;;  %v647_v13 = vpop.f32.mrf.mxu2 }
  0xd3   :  { %600 = vmatmul.bf16.gmra.mxu1 %v988_v17 }
  0xd6   :  { %v216_v20 = vpop.f32.mrf.mxu0 }
  0xd7   :  { %v297_v22 = vpack.c.bf16 %v216_v20, %v216_v20 }
  0xd8   :  { %v995_v27 = vld [vmem:[#allocation3 + $0x30] sm:$0xf] }
  0xd9   :  { %313 = vst [vmem:[#allocation3 + $0x38] sm:$0xf] %v297_v22  ;;  %v650_v19 = vpop.f32.mrf.mxu2 }
  0xde   :  { %v219_v25 = vpop.f32.mrf.mxu0 }
  0xdf   :  { %v298_v26 = vpack.c.bf16 %v219_v25, %v219_v25 }
  0xe0   :  { %v1152_v28 = vld [vmem:[#allocation3 + $0x34] sm:$0xf0] }
  0xe1   :  { %314 = vst [vmem:[#allocation3 + $0x40] sm:$0xf] %v298_v26  ;;  %v996_v29 = vor.u32 %v1152_v28, %v995_v27  ;;  %v652_v25 = vpop.f32.mrf.mxu2 }
  0xe3   :  { %605 = vmatmul.bf16.gmra.mxu1 %v996_v29 }
  0xe6   :  { %v221_v32 = vpop.f32.mrf.mxu0 }
  0xe7   :  { %v299_v34 = vpack.c.bf16 %v221_v32, %v221_v32 }
  0xe8   :  { %v1003_v39 = vld [vmem:[#allocation3 + $0x40] sm:$0xf] }
  0xe9   :  { %315 = vst [vmem:[#allocation3 + $0x48] sm:$0xf] %v299_v34  ;;  %v655_v34 = vpop.f32.mrf.mxu2 }
  0xee   :  { %v224_v37 = vpop.f32.mrf.mxu0 }
  0xef   :  { %v300_v38 = vpack.c.bf16 %v224_v37, %v224_v37 }
  0xf0   :  { %v1154_v40 = vld [vmem:[#allocation3 + $0x44] sm:$0xf0] }
  0xf1   :  { %316 = vst [vmem:[#allocation3 + $0x50] sm:$0xf] %v300_v38  ;;  %v1004_v41 = vor.u32 %v1154_v40, %v1003_v39  ;;  %v657_v39 = vpop.f32.mrf.mxu2 }
  0xf3   :  { %610 = vmatmul.bf16.gmra.mxu1 %v1004_v41 }
  0xf6   :  { %v226_v44 = vpop.f32.mrf.mxu0 }
  0xf7   :  { %v301_v46 = vpack.c.bf16 %v226_v44, %v226_v44 }
  0xf8   :  { %v1011_v50 = vld [vmem:[#allocation3 + $0x50] sm:$0xf] }
  0xf9   :  { %317 = vst [vmem:[#allocation3 + $0x58] sm:$0xf] %v301_v46  ;;  %v660_v45 = vpop.f32.mrf.mxu2 }
  0xfe   :  { %v229_v48 = vpop.f32.mrf.mxu0 }
  0xff   :  { %v302_v49 = vpack.c.bf16 %v229_v48, %v229_v48 }
 0x100   :  { %v1156_v51 = vld [vmem:[#allocation3 + $0x54] sm:$0xf0] }
 0x101   :  { %318 = vst [vmem:[#allocation3 + $0x60] sm:$0xf] %v302_v49  ;;  %v1012_v52 = vor.u32 %v1156_v51, %v1011_v50  ;;  %v662_v53 = vpop.f32.mrf.mxu2 }
 0x103   :  { %615 = vmatmul.bf16.gmra.mxu1 %v1012_v52 }
 0x106   :  { %v231_v55 = vpop.f32.mrf.mxu0 }
 0x107   :  { %v303_v56 = vpack.c.bf16 %v231_v55, %v231_v55 }
 0x108   :  { %v1019_v60 = vld [vmem:[#allocation3 + $0x60] sm:$0xf] }
 0x109   :  { %319 = vst [vmem:[#allocation3 + $0x68] sm:$0xf] %v303_v56 }
 0x10e   :  { %v234_v58 = vpop.f32.mrf.mxu0 }
 0x10f   :  { %v304_v59 = vpack.c.bf16 %v234_v58, %v234_v58  ;;  %v665_v58 = vpop.f32.mrf.mxu2 }
 0x110   :  { %v1158_v61 = vld [vmem:[#allocation3 + $0x64] sm:$0xf0] }
 0x111   :  { %320 = vst [vmem:[#allocation3 + $0x70] sm:$0xf] %v304_v59  ;;  %v1020_v63 = vor.u32 %v1158_v61, %v1019_v60 }
 0x113   :  { %620 = vmatmul.bf16.gmra.mxu1 %v1020_v63 }
 0x116   :  { %v236_v2 = vpop.f32.mrf.mxu0 }
 0x117   :  { %v305_v3 = vpack.c.bf16 %v236_v2, %v236_v2  ;;  %v667_v2 = vpop.f32.mrf.mxu2 }
 0x118   :  { %v1027_v7 = vld [vmem:[#allocation3 + $0x70] sm:$0xf] }
 0x119   :  { %321 = vst [vmem:[#allocation3 + $0x78] sm:$0xf] %v305_v3 }
 0x120   :  { %v1160_v8 = vld [vmem:[#allocation3 + $0x74] sm:$0xf0] }
 0x121   :  { %v1028_v9 = vor.u32 %v1160_v8, %v1027_v7  ;;  %v670_v8 = vpop.f32.mrf.mxu2 }
 0x123   :  { %625 = vmatmul.bf16.gmra.mxu1 %v1028_v9 }
 0x130   :  { %v591_v11 = vpop.f32.mrf.mxu1 }
 0x131   :  { %v592_v14 = vadd.f32 %v1445_v12, %v591_v11 }
 0x133   :  { %v641_v16 = vadd.f32 %v640_v0, %v592_v14 }
 0x135   :  { %v680_v20 = vmax.f32 %v641_v16, 0.0 }
 0x138   :  { %v593_v15 = vpop.f32.mrf.mxu1 }
 0x139   :  { %v594_v17 = vadd.f32 %v1445_v12, %v593_v15  ;;  %v672_v15 = vpop.f32.mrf.mxu2 }
 0x13b   :  { %v643_v18 = vadd.f32 %v642_v6, %v594_v17 }
 0x13d   :  { %v681_v21 = vmax.f32 %v643_v18, 0.0 }
 0x13f   :  { %v696_v22 = vpack.c.bf16 %v681_v21, %v680_v20 }
 0x140   :  { %v596_v23 = vpop.f32.mrf.mxu1 }
 0x141   :  { %780 = vmatmul.bf16.vlgmr.msra.gmra.mxu3 %v696_v22  ;;  %v597_v24 = vadd.f32 %v1445_v12, %v596_v23  ;;  %v675_v23 = vpop.f32.mrf.mxu2 }
 0x143   :  { %v646_v27 = vadd.f32 %v645_v10, %v597_v24 }
 0x145   :  { %v682_v30 = vmax.f32 %v646_v27, 0.0 }
 0x148   :  { %v598_v26 = vpop.f32.mrf.mxu1 }
 0x149   :  { %v599_v28 = vadd.f32 %v1445_v12, %v598_v26 }
 0x14b   :  { %v648_v29 = vadd.f32 %v647_v13, %v599_v28 }
 0x14d   :  { %v683_v31 = vmax.f32 %v648_v29, 0.0  ;;  %v677_v29 = vpop.f32.mrf.mxu2 }
 0x14f   :  { %v697_v32 = vpack.c.bf16 %v683_v31, %v682_v30 }
 0x150   :  { %v601_v33 = vpop.f32.mrf.mxu1 }
 0x151   :  { %785 = vmatmul.bf16.gmra.mxu3 %v697_v32  ;;  %v602_v35 = vadd.f32 %v1445_v12, %v601_v33 }
 0x153   :  { %v651_v37 = vadd.f32 %v650_v19, %v602_v35  ;;  %v1466_v35 = vld [vmem:[%s1514_s6] ss:$0 sm:$0xff] }
 0x155   :  { %v684_v41 = vmax.f32 %v651_v37, 0.0 }
 0x158   :  { %v603_v36 = vpop.f32.mrf.mxu1 }
 0x159   :  { %v604_v38 = vadd.f32 %v1445_v12, %v603_v36 }
 0x15b   :  { %v653_v40 = vadd.f32 %v652_v25, %v604_v38 }
 0x15d   :  { %v685_v42 = vmax.f32 %v653_v40, 0.0 }
 0x15f   :  { %v698_v43 = vpack.c.bf16 %v685_v42, %v684_v41 }
 0x160   :  { %v606_v44 = vpop.f32.mrf.mxu1 }
 0x161   :  { %790 = vmatmul.bf16.gmra.mxu3 %v698_v43  ;;  %v607_v46 = vadd.f32 %v1445_v12, %v606_v44 }
 0x163   :  { %v656_v48 = vadd.f32 %v655_v34, %v607_v46 }
 0x165   :  { %v686_v51 = vmax.f32 %v656_v48, 0.0 }
 0x168   :  { %v608_v47 = vpop.f32.mrf.mxu1 }
 0x169   :  { %v609_v49 = vadd.f32 %v1445_v12, %v608_v47 }
 0x16b   :  { %v658_v50 = vadd.f32 %v657_v39, %v609_v49 }
 0x16d   :  { %v687_v52 = vmax.f32 %v658_v50, 0.0 }
 0x16f   :  { %v699_v54 = vpack.c.bf16 %v687_v52, %v686_v51 }
 0x170   :  { %v611_v55 = vpop.f32.mrf.mxu1 }
 0x171   :  { %795 = vmatmul.bf16.gmra.mxu3 %v699_v54  ;;  %v612_v56 = vadd.f32 %v1445_v12, %v611_v55 }
 0x173   :  { %v661_v59 = vadd.f32 %v660_v45, %v612_v56 }
 0x175   :  { %v688_v62 = vmax.f32 %v661_v59, 0.0 }
 0x178   :  { %v613_v57 = vpop.f32.mrf.mxu1 }
 0x179   :  { %v614_v60 = vadd.f32 %v1445_v12, %v613_v57 }
 0x17b   :  { %v663_v61 = vadd.f32 %v662_v53, %v614_v60 }
 0x17d   :  { %v689_v63 = vmax.f32 %v663_v61, 0.0 }
 0x17f   :  { %v700_v0 = vpack.c.bf16 %v689_v63, %v688_v62 }
 0x180   :  { %v616_v1 = vpop.f32.mrf.mxu1 }
 0x181   :  { %800 = vmatmul.bf16.gmra.mxu3 %v700_v0  ;;  %v617_v3 = vadd.f32 %v1445_v12, %v616_v1 }
 0x183   :  { %v666_v5 = vadd.f32 %v665_v58, %v617_v3 }
 0x185   :  { %v690_v9 = vmax.f32 %v666_v5, 0.0 }
 0x188   :  { %v618_v4 = vpop.f32.mrf.mxu1 }
 0x189   :  { %v619_v6 = vadd.f32 %v1445_v12, %v618_v4 }
 0x18b   :  { %v668_v7 = vadd.f32 %v667_v2, %v619_v6 }
 0x18d   :  { %v691_v10 = vmax.f32 %v668_v7, 0.0 }
 0x18f   :  { %v701_v11 = vpack.c.bf16 %v691_v10, %v690_v9 }
 0x190   :  { %v621_v13 = vpop.f32.mrf.mxu1 }
 0x191   :  { %805 = vmatmul.bf16.gmra.mxu3 %v701_v11  ;;  %v622_v14 = vadd.f32 %v1445_v12, %v621_v13 }
 0x193   :  { %v671_v17 = vadd.f32 %v670_v8, %v622_v14 }
 0x195   :  { %v692_v20 = vmax.f32 %v671_v17, 0.0 }
 0x198   :  { %v623_v16 = vpop.f32.mrf.mxu1 }
 0x199   :  { %v624_v18 = vadd.f32 %v1445_v12, %v623_v16 }
 0x19b   :  { %v673_v19 = vadd.f32 %v672_v15, %v624_v18 }
 0x19d   :  { %v693_v21 = vmax.f32 %v673_v19, 0.0 }
 0x19f   :  { %v702_v22 = vpack.c.bf16 %v693_v21, %v692_v20 }
 0x1a0   :  { %v626_v24 = vpop.f32.mrf.mxu1 }
 0x1a1   :  { %810 = vmatmul.bf16.gmra.mxu3 %v702_v22  ;;  %v627_v25 = vadd.f32 %v1445_v12, %v626_v24 }
 0x1a3   :  { %v676_v27 = vadd.f32 %v675_v23, %v627_v25 }
 0x1a5   :  { %v694_v31 = vmax.f32 %v676_v27, 0.0 }
 0x1a8   :  { %v628_v26 = vpop.f32.mrf.mxu1 }
 0x1a9   :  { %v629_v28 = vadd.f32 %v1445_v12, %v628_v26 }
 0x1ab   :  { %v678_v30 = vadd.f32 %v677_v29, %v629_v28 }
 0x1ad   :  { %v695_v32 = vmax.f32 %v678_v30, 0.0 }
 0x1af   :  { %v703_v33 = vpack.c.bf16 %v695_v32, %v694_v31 }
 0x1b1   :  { %815 = vmatmul.bf16.gmra.mxu3 %v703_v33 }
 0x1c4   :  { %v781_v34 = vpop.f32.mrf.mxu3 }
 0x1c5   :  { %v782_v36 = vadd.f32 %v1466_v35, %v781_v34 }
 0x1c7   :  { %v837_v38 = vmul.f32 0.01, %v782_v36  ;;  %vm821_vm0 = vcmp.gt.f32.partialorder %v782_v36, 0.0 }
 0x1c9   :  { %v853_v40 = vsel %vm821_vm0, %v782_v36, %v837_v38 }
 0x1cc   :  { %v783_v37 = vpop.f32.mrf.mxu3 }
 0x1cd   :  { %v784_v39 = vadd.f32 %v1466_v35, %v783_v37 }
 0x1cf   :  { %vm822_vm1 = vcmp.gt.f32.partialorder %v784_v39, 0.0  ;;  %v838_v12 = vmul.f32 0.01, %v784_v39 }
 0x1d1   :  { %v854_v41 = vsel %vm822_vm1, %v784_v39, %v838_v12 }
 0x1d2   :  { %v1188_v42 = vpack.c.bf16 %v854_v41, %v853_v40 }
 0x1d4   :  { %1189 = vst [vmem:[%s1515_s7] sm:$0xff] %v1188_v42   ;;  %v786_v43 = vpop.f32.mrf.mxu3 }
 0x1d5   :  { %v787_v44 = vadd.f32 %v1466_v35, %v786_v43 }
 0x1d7   :  { %v839_v46 = vmul.f32 0.01, %v787_v44  ;;  %vm823_vm2 = vcmp.gt.f32.partialorder %v787_v44, 0.0 }
 0x1d9   :  { %v855_v49 = vsel %vm823_vm2, %v787_v44, %v839_v46 }
 0x1dc   :  { %v788_v45 = vpop.f32.mrf.mxu3 }
 0x1dd   :  { %v789_v47 = vadd.f32 %v1466_v35, %v788_v45 }
 0x1df   :  { %vm824_vm3 = vcmp.gt.f32.partialorder %v789_v47, 0.0  ;;  %v840_v48 = vmul.f32 0.01, %v789_v47 }
 0x1e1   :  { %v856_v50 = vsel %vm824_vm3, %v789_v47, %v840_v48 }
 0x1e2   :  { %v1193_v51 = vpack.c.bf16 %v856_v50, %v855_v49 }
 0x1e4   :  { %1225 = vst [vmem:[%s1515_s7 + $0x8] sm:$0xff] %v1193_v51   ;;  %v791_v52 = vpop.f32.mrf.mxu3 }
 0x1e5   :  { %v792_v53 = vadd.f32 %v1466_v35, %v791_v52 }
 0x1e7   :  { %v841_v55 = vmul.f32 0.01, %v792_v53  ;;  %vm825_vm4 = vcmp.gt.f32.partialorder %v792_v53, 0.0 }
 0x1e9   :  { %v857_v58 = vsel %vm825_vm4, %v792_v53, %v841_v55 }
 0x1ec   :  { %v793_v54 = vpop.f32.mrf.mxu3 }
 0x1ed   :  { %v794_v56 = vadd.f32 %v1466_v35, %v793_v54 }
 0x1ef   :  { %vm826_vm5 = vcmp.gt.f32.partialorder %v794_v56, 0.0  ;;  %v842_v57 = vmul.f32 0.01, %v794_v56 }
 0x1f1   :  { %v858_v59 = vsel %vm826_vm5, %v794_v56, %v842_v57 }
 0x1f2   :  { %v1198_v60 = vpack.c.bf16 %v858_v59, %v857_v58 }
 0x1f4   :  { %1226 = vst [vmem:[%s1515_s7 + $0x10] sm:$0xff] %v1198_v60   ;;  %v796_v61 = vpop.f32.mrf.mxu3 }
 0x1f5   :  { %v797_v62 = vadd.f32 %v1466_v35, %v796_v61 }
 0x1f7   :  { %v843_v0 = vmul.f32 0.01, %v797_v62  ;;  %vm827_vm6 = vcmp.gt.f32.partialorder %v797_v62, 0.0 }
 0x1f9   :  { %v859_v3 = vsel %vm827_vm6, %v797_v62, %v843_v0 }
 0x1fc   :  { %v798_v63 = vpop.f32.mrf.mxu3 }
 0x1fd   :  { %v799_v1 = vadd.f32 %v1466_v35, %v798_v63 }
 0x1ff   :  { %vm828_vm7 = vcmp.gt.f32.partialorder %v799_v1, 0.0  ;;  %v844_v2 = vmul.f32 0.01, %v799_v1 }
 0x201   :  { %v860_v4 = vsel %vm828_vm7, %v799_v1, %v844_v2 }
 0x202   :  { %v1203_v5 = vpack.c.bf16 %v860_v4, %v859_v3 }
 0x204   :  { %1227 = vst [vmem:[%s1515_s7 + $0x18] sm:$0xff] %v1203_v5   ;;  %v801_v6 = vpop.f32.mrf.mxu3 }
 0x205   :  { %v802_v7 = vadd.f32 %v1466_v35, %v801_v6 }
 0x207   :  { %v845_v9 = vmul.f32 0.01, %v802_v7  ;;  %vm829_vm8 = vcmp.gt.f32.partialorder %v802_v7, 0.0 }
 0x209   :  { %v861_v13 = vsel %vm829_vm8, %v802_v7, %v845_v9 }
 0x20c   :  { %v803_v8 = vpop.f32.mrf.mxu3 }
 0x20d   :  { %v804_v10 = vadd.f32 %v1466_v35, %v803_v8 }
 0x20f   :  { %vm830_vm9 = vcmp.gt.f32.partialorder %v804_v10, 0.0  ;;  %v846_v11 = vmul.f32 0.01, %v804_v10 }
 0x211   :  { %v862_v14 = vsel %vm830_vm9, %v804_v10, %v846_v11 }
 0x212   :  { %v1208_v15 = vpack.c.bf16 %v862_v14, %v861_v13 }
 0x214   :  { %1228 = vst [vmem:[%s1515_s7 + $0x20] sm:$0xff] %v1208_v15   ;;  %v806_v16 = vpop.f32.mrf.mxu3 }
 0x215   :  { %v807_v17 = vadd.f32 %v1466_v35, %v806_v16 }
 0x217   :  { %v847_v19 = vmul.f32 0.01, %v807_v17  ;;  %vm831_vm10 = vcmp.gt.f32.partialorder %v807_v17, 0.0 }
 0x219   :  { %v863_v22 = vsel %vm831_vm10, %v807_v17, %v847_v19 }
 0x21c   :  { %v808_v18 = vpop.f32.mrf.mxu3 }
 0x21d   :  { %v809_v20 = vadd.f32 %v1466_v35, %v808_v18 }
 0x21f   :  { %vm832_vm11 = vcmp.gt.f32.partialorder %v809_v20, 0.0  ;;  %v848_v21 = vmul.f32 0.01, %v809_v20 }
 0x221   :  { %v864_v23 = vsel %vm832_vm11, %v809_v20, %v848_v21 }
 0x222   :  { %v1213_v24 = vpack.c.bf16 %v864_v23, %v863_v22 }
 0x224   :  { %1229 = vst [vmem:[%s1515_s7 + $0x28] sm:$0xff] %v1213_v24   ;;  %v811_v25 = vpop.f32.mrf.mxu3 }
 0x225   :  { %v812_v26 = vadd.f32 %v1466_v35, %v811_v25 }
 0x227   :  { %v849_v28 = vmul.f32 0.01, %v812_v26  ;;  %vm833_vm12 = vcmp.gt.f32.partialorder %v812_v26, 0.0 }
 0x229   :  { %v865_v31 = vsel %vm833_vm12, %v812_v26, %v849_v28 }
 0x22c   :  { %v813_v27 = vpop.f32.mrf.mxu3 }
 0x22d   :  { %v814_v29 = vadd.f32 %v1466_v35, %v813_v27 }
 0x22f   :  { %vm834_vm13 = vcmp.gt.f32.partialorder %v814_v29, 0.0  ;;  %v850_v30 = vmul.f32 0.01, %v814_v29 }
 0x231   :  { %v866_v32 = vsel %vm834_vm13, %v814_v29, %v850_v30 }
 0x232   :  { %v1218_v33 = vpack.c.bf16 %v866_v32, %v865_v31 }
 0x234   :  { %1230 = vst [vmem:[%s1515_s7 + $0x30] sm:$0xff] %v1218_v33   ;;  %v816_v34 = vpop.f32.mrf.mxu3 }
 0x235   :  { %v817_v36 = vadd.f32 %v1466_v35, %v816_v34 }
 0x237   :  { %v851_v38 = vmul.f32 0.01, %v817_v36  ;;  %vm835_vm14 = vcmp.gt.f32.partialorder %v817_v36, 0.0 }
 0x239   :  { %v867_v40 = vsel %vm835_vm14, %v817_v36, %v851_v38 }
 0x23c   :  { %v818_v37 = vpop.f32.mrf.mxu3 }
 0x23d   :  { %v819_v39 = vadd.f32 %v1466_v35, %v818_v37 }
 0x23f   :  { %vm836_vm15 = vcmp.gt.f32.partialorder %v819_v39, 0.0  ;;  %v852_v12 = vmul.f32 0.01, %v819_v39 }
 0x241   :  { %v868_v41 = vsel %vm836_vm15, %v819_v39, %v852_v12 }
 0x242   :  { %v1223_v42 = vpack.c.bf16 %v868_v41, %v867_v40 }
 0x244   :  { %1231 = vst [vmem:[%s1515_s7 + $0x38] sm:$0xff] %v1223_v42  }

// kernel: sage_dsp_forward.9
= control target key start
LH: loop header
LB: loop body
LE: loop exit
PB: predicated region body
PF: predicated region fallthrough
CT: control target
= control target key end

     0   :  { %s527_s1 = inlined_call_operand.vmem [shape: bf16[128,128], index: 1, kind: input, shape index: {}]   ;;  %s528_s2 = inlined_call_operand.vmem [shape: bf16[128,128], index: 2, kind: input, shape index: {}]   ;;  %s529_s0 = inlined_call_operand.vmem [shape: bf16[8,128], index: 0, kind: input, shape index: {}]   ;;  %s530_s3 = inlined_call_operand.vmem [shape: f32[1,128], index: 3, kind: input, shape index: {}]   ;;  %s531_s4 = inlined_call_operand.vmem [shape: bf16[128,128], index: 4, kind: input, shape index: {}]   ;;  %s532_s5 = inlined_call_operand.vmem [shape: f32[1,128], index: 5, kind: input, shape index: {}]   ;;  %s533_s6 = inlined_call_operand.vmem [shape: f32[8,128], index: 6, kind: output, shape index: {}]  }
   0x1   :  { %v389_v0 = vld [vmem:[%s527_s1 + $0x38] sm:$0xff]  ;;  %v388_v1 = vld [vmem:[%s527_s1 + $0x30] sm:$0xff]  ;;  %v387_v4 = vld [vmem:[%s527_s1 + $0x28] sm:$0xff] }
   0x2   :  { %94 = vmatpush.bf16.msra.mxu0 %v389_v0  ;;  %v397_v2 = vld [vmem:[%s528_s2 + $0x38] sm:$0xff]  ;;  %v396_v3 = vld [vmem:[%s528_s2 + $0x30] sm:$0xff]  ;;  %v395_v5 = vld [vmem:[%s528_s2 + $0x28] sm:$0xff] }
   0x3   :  { %182 = vmatpush.bf16.msra.mxu1 %v397_v2  ;;  %v386_v6 = vld [vmem:[%s527_s1 + $0x20] sm:$0xff]  ;;  %v385_v8 = vld [vmem:[%s527_s1 + $0x18] sm:$0xff]  ;;  %v384_v10 = vld [vmem:[%s527_s1 + $0x10] sm:$0xff] }
   0x4   :  { %v394_v7 = vld [vmem:[%s528_s2 + $0x20] sm:$0xff]  ;;  %v393_v9 = vld [vmem:[%s528_s2 + $0x18] sm:$0xff]  ;;  %v392_v11 = vld [vmem:[%s528_s2 + $0x10] sm:$0xff] }
   0x5   :  { %v383_v12 = vld [vmem:[%s527_s1 + $0x8] sm:$0xff]  ;;  %v382_v14 = vld [vmem:[%s527_s1] sm:$0xff]  ;;  %v405_v17 = vld [vmem:[%s531_s4 + $0x38] sm:$0xff] }
   0x6   :  { %95 = vmatpush.bf16.msra.mxu0 %v388_v1  ;;  %v391_v13 = vld [vmem:[%s528_s2 + $0x8] sm:$0xff]  ;;  %v29_v15 = vld [vmem:[%s529_s0] sm:$0xf]  ;;  %267 = vmatpush.bf16.msra.mxu2 %v405_v17  ;;  %v404_v18 = vld [vmem:[%s531_s4 + $0x30] sm:$0xff] }
   0x7   :  { %183 = vmatpush.bf16.msra.mxu1 %v396_v3  ;;  %v390_v16 = vld [vmem:[%s528_s2] sm:$0xff]  ;;  %v403_v19 = vld [vmem:[%s531_s4 + $0x28] sm:$0xff]  ;;  %v401_v21 = vld [vmem:[%s531_s4 + $0x18] sm:$0xff] }
   0x8   :  { %v402_v20 = vld [vmem:[%s531_s4 + $0x20] sm:$0xff]  ;;  %v400_v22 = vld [vmem:[%s531_s4 + $0x10] sm:$0xff]  ;;  %v399_v26 = vld [vmem:[%s531_s4 + $0x8] sm:$0xff] }
   0x9   :  { %v398_v27 = vld [vmem:[%s531_s4] sm:$0xff] }
   0xa   :  { %96 = vmatpush.bf16.msra.mxu0 %v387_v4  ;;  %268 = vmatpush.bf16.msra.mxu2 %v404_v18  ;;  %v406_v28 = vld [vmem:[%s530_s3] ss:$0 sm:$0xff] }
   0xb   :  { %184 = vmatpush.bf16.msra.mxu1 %v395_v5  ;;  %v407_v35 = vld [vmem:[%s532_s5] ss:$0 sm:$0xff] }
   0xe   :  { %97 = vmatpush.bf16.msra.mxu0 %v386_v6  ;;  %269 = vmatpush.bf16.msra.mxu2 %v403_v19 }
   0xf   :  { %185 = vmatpush.bf16.msra.mxu1 %v394_v7 }
  0x12   :  { %98 = vmatpush.bf16.msra.mxu0 %v385_v8  ;;  %270 = vmatpush.bf16.msra.mxu2 %v402_v20 }
  0x13   :  { %186 = vmatpush.bf16.msra.mxu1 %v393_v9 }
  0x16   :  { %99 = vmatpush.bf16.msra.mxu0 %v384_v10  ;;  %271 = vmatpush.bf16.msra.mxu2 %v401_v21 }
  0x17   :  { %187 = vmatpush.bf16.msra.mxu1 %v392_v11 }
  0x1a   :  { %100 = vmatpush.bf16.msra.mxu0 %v383_v12  ;;  %272 = vmatpush.bf16.msra.mxu2 %v400_v22 }
  0x1b   :  { %188 = vmatpush.bf16.msra.mxu1 %v391_v13 }
  0x1e   :  { %101 = vmatpush.bf16.msra.mxu0 %v382_v14  ;;  %273 = vmatpush.bf16.msra.mxu2 %v399_v26 }
  0x1f   :  { %189 = vmatpush.bf16.msra.mxu1 %v390_v16 }
  0x21   :  { %102 = vmatmul.bf16.vlgmr.msra.gmra.mxu0 %v29_v15 }
  0x22   :  { %274 = vmatpush.bf16.msra.mxu2 %v398_v27 }
  0x9e   :  { %v103_v23 = vpop.f32.mrf.mxu0 }
  0x9f   :  { %v113_v24 = vpack.c.bf16 %v103_v23, %v103_v23 }
  0xa1   :  { %190 = vmatmul.bf16.vlgmr.msra.gmra.mxu1 %v113_v24 }
  0xa6   :  { %v105_v25 = vpop.f32.mrf.mxu0 }
 0x11e   :  { %v191_v29 = vpop.f32.mrf.mxu1 }
 0x11f   :  { %v192_v30 = vadd.f32 %v406_v28, %v191_v29 }
 0x121   :  { %v196_v31 = vmul.f32 0.01, %v192_v30  ;;  %vm195_vm0 = vcmp.gt.f32.partialorder %v192_v30, 0.0 }
 0x123   :  { %v197_v32 = vsel %vm195_vm0, %v192_v30, %v196_v31 }
 0x124   :  { %v198_v33 = vpack.c.bf16 %v197_v32, %v197_v32 }
 0x126   :  { %v193_v34 = vpop.f32.mrf.mxu1  ;;  %275 = vmatmul.bf16.vlgmr.msra.gmra.mxu2 %v198_v33 }
 0x1a9   :  { %v276_v36 = vpop.f32.mrf.mxu2 }
 0x1aa   :  { %v277_v37 = vadd.f32 %v407_v35, %v276_v36 }
 0x1ac   :  { %v280_v38 = vmax.f32 %v277_v37, 0.0 }
 0x1ae   :  { %281 = vst [vmem:[%s533_s6] sm:$0xff] %v280_v38 }
 0x1b1   :  { %v278_v39 = vpop.f32.mrf.mxu2 }

</bundles_post_ra>
